<compile_context>
chip_gen: v7x
topology: tpu7x:2x2x1
jax: 0.10.0
libtpu: 0.0.40
codegen_flags: <defaults>
</compile_context>

<pallas_src>
import functools
import math

import jax
import jax.numpy as jnp
from jax.experimental import pallas as pl
from jax.experimental.pallas import tpu as pltpu


# ============================================================================
# Fused kernel
# ============================================================================
def _vae_kernel(x_ref, eps_ref, slab_ref, xhat_ref, stats_ref, *, dims, offs):
    B, C_in, L0, L_enc, latent = dims
    L1 = L0              # conv1 'same'
    L2 = L1 // 2         # after pool1 (conv2 'same' keeps it)
    L_up1 = 2 * L_enc    # after decoder upsample 1
    L_dec = 4 * L_enc    # reconstruction length
    f32 = jnp.float32

    def param(name):
        c0, r, c = offs[name]
        return slab_ref[0:r, c0:c0 + c]          # static window load from the packed slab

    def conv(xpad, name, K, L_out, relu):
        """'Same' Conv1d over a batched, per-sample zero-padded input.

        xpad : (C, B*W) with per-sample padded width W (zeros already at the pads).
        The K shifted per-sample slices are stacked along sublanes (im2col in VMEM)
        plus one ones-row so the bias is folded into the single MXU matmul.
        """
        W = xpad.shape[1] // B
        rows = [jnp.concatenate(
                    [xpad[:, b * W + k: b * W + k + L_out] for b in range(B)], axis=1)
                for k in range(K)]
        rows.append(jnp.ones((1, B * L_out), f32))
        A = jnp.concatenate(rows, axis=0)                         # (K*C + 1, B*L_out)
        y = jnp.dot(param(name), A, preferred_element_type=f32)   # (C_out, B*L_out)
        return jnp.maximum(y, 0.0) if relu else y

    # ------------------------------- Encoder --------------------------------
    z5 = jnp.zeros((C_in, 5), f32)
    xpad1 = jnp.concatenate(
        sum([[z5, x_ref[b].astype(f32), z5] for b in range(B)], []), axis=1)
    h1 = conv(xpad1, "w1", 11, L1, relu=True)                     # (16, B*L1)

    # MaxPool(2,2) fused with zero-pad(3) for conv2 via exact 0/1 block-diag selections
    x2p = jnp.maximum(jnp.dot(h1, param("se1"), preferred_element_type=f32),
                      jnp.dot(h1, param("so1"), preferred_element_type=f32))
    h2 = conv(x2p, "w2", 7, L2, relu=True)                        # (32, B*L2)

    # MaxPool(2,2) fused with zero-pad(1) for conv3
    x3p = jnp.maximum(jnp.dot(h2, param("se2"), preferred_element_type=f32),
                      jnp.dot(h2, param("so2"), preferred_element_type=f32))
    h3 = conv(x3p, "w3", 3, L_enc, relu=True)                     # (16, B*L_enc)

    # Flatten (c, l) -> l-major rows with the batch in lanes; fc1 weight is pre-permuted
    # to the same order, so fc1 is ONE matmul (bias via the ones row).
    # TODO(synk): nn.Dropout(0.5) around fc1 is identity in eval mode; training-mode
    #             dropout is not implemented.
    h3cols = [jnp.concatenate(
                  [h3[:, b * L_enc + l: b * L_enc + l + 1] for b in range(B)], axis=1)
              for l in range(L_enc)]
    h3cols.append(jnp.ones((1, B), f32))
    h3flat = jnp.concatenate(h3cols, axis=0)                      # (16*L_enc + 1, B)
    y1 = jax.nn.sigmoid(jnp.dot(param("fc1"), h3flat, preferred_element_type=f32))

    # fc_mu and fc_log_var merged into one matmul; single merged output store.
    y1b = jnp.concatenate([y1, jnp.ones((1, B), f32)], axis=0)
    ml = jnp.dot(param("wml"), y1b, preferred_element_type=f32)   # (2*latent, B)
    stats_ref[...] = ml.astype(stats_ref.dtype)

    mu = ml[:latent, :]
    logvar = ml[latent:, :]
    z = mu + jnp.exp(0.5 * logvar) * eps_ref[...].astype(f32)     # (latent, B)

    # ------------------------------- Decoder --------------------------------
    # dec_fc (rows pre-permuted l-major) -> each per-sample (16, L_enc) image column is a
    # contiguous 16-row block of d; nearest-Upsample(x2) + pad(1) is done by emitting each
    # column twice in the concat; the dec_fc bias (upsampled + padded) is pre-baked.
    d = jnp.dot(param("wdec"), z, preferred_element_type=f32)     # (16*L_enc, B)
    zc = jnp.zeros((16, 1), f32)
    pieces = []
    for b in range(B):
        pieces.append(zc)
        for l in range(L_enc):
            col = d[l * 16:(l + 1) * 16, b:b + 1]
            pieces.append(col)
            pieces.append(col)
        pieces.append(zc)
    xt1 = jnp.concatenate(pieces, axis=1) + param("bdecp")        # (16, B*(2*L_enc+2))
    ht1 = conv(xt1, "wt1", 3, L_up1, relu=True)                   # (32, B*2*L_enc)

    # Upsample(x2) + zero-pad(3) for conv_t2 via one block-diag 0/1 selection matmul
    xt2 = jnp.dot(ht1, param("u2"), preferred_element_type=f32)   # (32, B*(4*L_enc+6))
    ht2 = conv(xt2, "wt2", 7, L_dec, relu=True)                   # (16, B*4*L_enc)

    # zero-pad(5) for conv_t3 via zero-column concat (no pad matmul), final conv no ReLU
    z5d = jnp.zeros((16, 5), f32)
    pieces = []
    for b in range(B):
        pieces.extend([z5d, ht2[:, b * L_dec:(b + 1) * L_dec], z5d])
    xt3 = jnp.concatenate(pieces, axis=1)                         # (16, B*(4*L_enc+10))
    xhat = conv(xt3, "wt3", 11, L_dec, relu=False)                # (C_in, B*L_dec)
    xhat_ref[...] = xhat.astype(xhat_ref.dtype)


# ============================================================================
# Forward wrapper: ONE grid-less pallas_call for the whole network
# ============================================================================
def vae_forward(slab, x, eps, *, offs, dims):
    B, C_in, L0, L_enc, latent = dims
    L_dec = 4 * L_enc

    kern = functools.partial(_vae_kernel, dims=dims, offs=offs)
    xhat2, stats = pl.pallas_call(
        kern,
        out_shape=(jax.ShapeDtypeStruct((C_in, B * L_dec), jnp.float32),
                   jax.ShapeDtypeStruct((2 * latent, B), jnp.float32)),
        compiler_params=pltpu.CompilerParams(vmem_limit_bytes=32 * 1024 * 1024),
    )(x, eps.T, slab)

    xhat = xhat2.reshape(C_in, B, L_dec).transpose(1, 0, 2)       # (B, C_in, L_dec)
    mu = stats[:latent].T                                         # (B, latent)
    logvar = stats[latent:].T                                     # (B, latent)
    return xhat, mu, logvar


# ============================================================================
# Parameter construction (PyTorch-default-style uniform init)
# ============================================================================
def _uniform(key, shape, fan_in):
    k = 1.0 / math.sqrt(fan_in)
    return jax.random.uniform(key, shape, jnp.float32, minval=-k, maxval=k)


def init_vae_params(key, input_channels, input_length, latent_dim):
    def conv_out_length(L, kernel_size=3, stride=1, padding=1):
        return (L + 2 * padding - kernel_size) // stride + 1

    L = conv_out_length(input_length, 11, 1, 5)
    L = conv_out_length(L, 2, 2, 0)
    L = conv_out_length(L, 7, 1, 3)
    L = conv_out_length(L, 2, 2, 0)
    L_enc = conv_out_length(L, 3, 1, 1)
    flat = 16 * L_enc
    half = flat // 2

    keys = jax.random.split(key, 20)
    p = {}
    p["conv1_w"] = _uniform(keys[0], (16, input_channels, 11), input_channels * 11)
    p["conv1_b"] = _uniform(keys[1], (16,), input_channels * 11)
    p["conv2_w"] = _uniform(keys[2], (32, 16, 7), 16 * 7)
    p["conv2_b"] = _uniform(keys[3], (32,), 16 * 7)
    p["conv3_w"] = _uniform(keys[4], (16, 32, 3), 32 * 3)
    p["conv3_b"] = _uniform(keys[5], (16,), 32 * 3)
    p["fc1_w"] = _uniform(keys[6], (half, flat), flat)
    p["fc1_b"] = _uniform(keys[7], (half,), flat)
    p["fc_mu_w"] = _uniform(keys[8], (latent_dim, half), half)
    p["fc_mu_b"] = _uniform(keys[9], (latent_dim,), half)
    p["fc_lv_w"] = _uniform(keys[10], (latent_dim, half), half)
    p["fc_lv_b"] = _uniform(keys[11], (latent_dim,), half)
    p["dec_fc_w"] = _uniform(keys[12], (flat, latent_dim), latent_dim)
    p["dec_fc_b"] = _uniform(keys[13], (flat,), latent_dim)
    p["convt1_w"] = _uniform(keys[14], (32, 16, 3), 16 * 3)
    p["convt1_b"] = _uniform(keys[15], (32,), 16 * 3)
    p["convt2_w"] = _uniform(keys[16], (16, 32, 7), 32 * 7)
    p["convt2_b"] = _uniform(keys[17], (16,), 32 * 7)
    p["convt3_w"] = _uniform(keys[18], (input_channels, 16, 11), 16 * 11)
    p["convt3_b"] = _uniform(keys[19], (input_channels,), 16 * 11)
    return p, L_enc


# ============================================================================
# One-time parameter preparation: pack everything into a single VMEM slab
# ============================================================================
def _pack_params(named):
    """Pack a dict of 2-D f32 arrays into one (R, C) slab, 128-lane aligned offsets."""
    R = max(a.shape[0] for a in named.values())
    R = ((R + 7) // 8) * 8
    offs, pieces, col = {}, [], 0
    for name, a in named.items():
        r, c = a.shape
        cpad = ((c + 127) // 128) * 128
        piece = jnp.zeros((R, cpad), jnp.float32).at[:r, :c].set(a.astype(jnp.float32))
        pieces.append(piece)
        offs[name] = (col, r, c)
        col += cpad
    return jnp.concatenate(pieces, axis=1), offs


def prepare_params(p, input_channels, input_length, latent_dim, L_enc, batch):
    f32 = jnp.float32
    B = batch
    L0 = input_length
    L1 = L0
    L2 = L1 // 2
    flat = 16 * L_enc
    half = flat // 2

    def packw(w, b):
        # PyTorch Conv1d weight (C_out, C_in, K) + bias -> (C_out, K*C_in + 1)
        C_out, C_in_, K = w.shape
        wp = jnp.transpose(w, (0, 2, 1)).reshape(C_out, K * C_in_)
        return jnp.concatenate([wp, b.reshape(C_out, 1)], axis=1)

    def pool_mats(L_in, pad_next):
        # block-diagonal (per-sample) even / odd selection, fused with next conv's zero-pad
        L_half = L_in // 2
        Wn = L_half + 2 * pad_next
        se = jnp.zeros((B * L_in, B * Wn), f32)
        so = jnp.zeros((B * L_in, B * Wn), f32)
        for b in range(B):
            rows = b * L_in + 2 * jnp.arange(L_half)
            cols = b * Wn + pad_next + jnp.arange(L_half)
            se = se.at[rows, cols].set(1.0)
            so = so.at[rows + 1, cols].set(1.0)
        return se, so

    def up_mat(L_in, pad_next):
        # block-diagonal nearest-upsample(x2) fused with next conv's zero-pad
        Wn = 2 * L_in + 2 * pad_next
        u = jnp.zeros((B * L_in, B * Wn), f32)
        for b in range(B):
            rows = b * L_in + jnp.arange(L_in)
            cols = b * Wn + pad_next + 2 * jnp.arange(L_in)
            u = u.at[rows, cols].set(1.0)
            u = u.at[rows, cols + 1].set(1.0)
        return u

    named = {}
    named["w1"] = packw(p["conv1_w"], p["conv1_b"])
    named["se1"], named["so1"] = pool_mats(L1, 3)
    named["w2"] = packw(p["conv2_w"], p["conv2_b"])
    named["se2"], named["so2"] = pool_mats(L2, 1)
    named["w3"] = packw(p["conv3_w"], p["conv3_b"])
    # fc1 with the (c, l) flatten re-ordered to l-major rows, bias as last column
    fc1w = p["fc1_w"].reshape(half, 16, L_enc).transpose(0, 2, 1).reshape(half, flat)
    named["fc1"] = jnp.concatenate([fc1w, p["fc1_b"].reshape(half, 1)], axis=1)
    # merged mu / log_var head, bias as last column
    wml = jnp.concatenate([p["fc_mu_w"], p["fc_lv_w"]], axis=0)
    bml = jnp.concatenate([p["fc_mu_b"], p["fc_lv_b"]], axis=0).reshape(-1, 1)
    named["wml"] = jnp.concatenate([wml, bml], axis=1)
    # dec_fc weight rows re-ordered l-major; bias pre-baked as upsampled+padded image
    named["wdec"] = (p["dec_fc_w"].reshape(16, L_enc, latent_dim)
                     .transpose(1, 0, 2).reshape(flat, latent_dim))
    bdec_img = p["dec_fc_b"].reshape(16, L_enc)
    bdecp = jnp.pad(jnp.repeat(bdec_img, 2, axis=1), ((0, 0), (1, 1)))
    named["bdecp"] = jnp.tile(bdecp, (1, B))
    named["wt1"] = packw(p["convt1_w"], p["convt1_b"])
    named["u2"] = up_mat(2 * L_enc, 3)
    named["wt2"] = packw(p["convt2_w"], p["convt2_b"])
    named["wt3"] = packw(p["convt3_w"], p["convt3_b"])

    slab, offs = _pack_params(named)
    dims = (B, input_channels, L0, L_enc, latent_dim)
    return slab, offs, dims


# ============================================================================
# Pure-JAX (XLA) reference of the same module, for a correctness check
# ============================================================================
def vae_reference(p, x, eps):
    P = jax.lax.Precision.HIGHEST

    def conv1d(h, w, b, pad):
        out = jax.lax.conv_general_dilated(
            h, w, window_strides=(1,), padding=[(pad, pad)],
            dimension_numbers=("NCH", "OIH", "NCH"), precision=P)
        return out + b[None, :, None]

    def maxpool2(h):
        Bn, C, L = h.shape
        return h.reshape(Bn, C, L // 2, 2).max(axis=-1)

    h = jax.nn.relu(conv1d(x, p["conv1_w"], p["conv1_b"], 5))
    h = maxpool2(h)
    h = jax.nn.relu(conv1d(h, p["conv2_w"], p["conv2_b"], 3))
    h = maxpool2(h)
    h = jax.nn.relu(conv1d(h, p["conv3_w"], p["conv3_b"], 1))
    Bn = x.shape[0]
    L_enc = h.shape[-1]
    flatv = h.reshape(Bn, -1)
    y1 = jax.nn.sigmoid(jnp.matmul(flatv, p["fc1_w"].T, precision=P) + p["fc1_b"])
    mu = jnp.matmul(y1, p["fc_mu_w"].T, precision=P) + p["fc_mu_b"]
    logvar = jnp.matmul(y1, p["fc_lv_w"].T, precision=P) + p["fc_lv_b"]
    z = mu + jnp.exp(0.5 * logvar) * eps
    d = jnp.matmul(z, p["dec_fc_w"].T, precision=P) + p["dec_fc_b"]
    img = d.reshape(Bn, 16, L_enc)
    t1 = jax.nn.relu(conv1d(jnp.repeat(img, 2, axis=-1), p["convt1_w"], p["convt1_b"], 1))
    t2 = jax.nn.relu(conv1d(jnp.repeat(t1, 2, axis=-1), p["convt2_w"], p["convt2_b"], 3))
    xhat = conv1d(t2, p["convt3_w"], p["convt3_b"], 5)
    return xhat, mu, logvar


# ============================================================================
if __name__ == "__main__":
    # Small shapes consistent with the module: (batch, channels, length)
    B, C, L, LATENT = 2, 4, 16, 8

    key = jax.random.PRNGKey(0)
    k_params, k_x, k_eps = jax.random.split(key, 3)

    params, L_enc = init_vae_params(k_params, C, L, LATENT)
    slab, offs, dims = prepare_params(params, C, L, LATENT, L_enc, B)

    x = jax.random.normal(k_x, (B, C, L), jnp.float32)
    eps = jax.random.normal(k_eps, (B, LATENT), jnp.float32)   # torch.randn_like(std)

    fwd = jax.jit(functools.partial(vae_forward, offs=offs, dims=dims))
    xhat, mu, logvar = fwd(slab, x, eps)
    jax.block_until_ready((xhat, mu, logvar))

    assert xhat.shape == (B, C, 4 * L_enc)
    assert mu.shape == (B, LATENT) and logvar.shape == (B, LATENT)

    # Correctness check against the pure-JAX reference (generous tol for MXU f32 matmuls)
    xhat_r, mu_r, lv_r = vae_reference(params, x, eps)
    for got, ref in ((xhat, xhat_r), (mu, mu_r), (logvar, lv_r)):
        assert float(jnp.max(jnp.abs(got - ref))) < 3e-2

    print("KERNEL_OK")
</pallas_src>

<mosaic_0001>
module attributes {stable_mosaic.version = 11 : i64} {
  func.func @_vae_kernel(%arg0: memref<2x4x16xf32, #tpu.memory_space<vmem>>, %arg1: memref<8x2xf32, #tpu.memory_space<vmem>>, %arg2: memref<64x2176xf32, #tpu.memory_space<vmem>>, %arg3: memref<4x32xf32, #tpu.memory_space<vmem>>, %arg4: memref<16x2xf32, #tpu.memory_space<vmem>>) attributes {dimension_semantics = [], scalar_prefetch = 0 : i64, scratch_operands = 0 : i64, tpu.core_type = #tpu.core_type<tc>} {
    %cst = arith.constant 0.000000e+00 : f32
    %0 = vector.broadcast %cst : f32 to vector<4x5xf32>
    %c0 = arith.constant 0 : index
    %c0_0 = arith.constant 0 : index
    %c0_1 = arith.constant 0 : index
    %1 = vector.load %arg0[%c0, %c0_0, %c0_1] : memref<2x4x16xf32, #tpu.memory_space<vmem>>, vector<1x4x16xf32>
    %2 = vector.shape_cast %1 : vector<1x4x16xf32> to vector<4x16xf32>
    %c1 = arith.constant 1 : index
    %c0_2 = arith.constant 0 : index
    %c0_3 = arith.constant 0 : index
    %3 = vector.load %arg0[%c1, %c0_2, %c0_3] : memref<2x4x16xf32, #tpu.memory_space<vmem>>, vector<1x4x16xf32>
    %4 = vector.shape_cast %3 : vector<1x4x16xf32> to vector<4x16xf32>
    %5 = tpu.concatenate %0, %2, %0, %0, %4, %0 in 1 : vector<4x5xf32>, vector<4x16xf32>, vector<4x5xf32>, vector<4x5xf32>, vector<4x16xf32>, vector<4x5xf32> -> vector<4x52xf32>
    %6 = vector.extract_strided_slice %5 {offsets = [0, 0], sizes = [4, 16], strides = [1, 1]} : vector<4x52xf32> to vector<4x16xf32>
    %7 = vector.extract_strided_slice %5 {offsets = [0, 26], sizes = [4, 16], strides = [1, 1]} : vector<4x52xf32> to vector<4x16xf32>
    %8 = tpu.concatenate %6, %7 in 1 : vector<4x16xf32>, vector<4x16xf32> -> vector<4x32xf32>
    %9 = vector.extract_strided_slice %5 {offsets = [0, 1], sizes = [4, 16], strides = [1, 1]} : vector<4x52xf32> to vector<4x16xf32>
    %10 = vector.extract_strided_slice %5 {offsets = [0, 27], sizes = [4, 16], strides = [1, 1]} : vector<4x52xf32> to vector<4x16xf32>
    %11 = tpu.concatenate %9, %10 in 1 : vector<4x16xf32>, vector<4x16xf32> -> vector<4x32xf32>
    %12 = vector.extract_strided_slice %5 {offsets = [0, 2], sizes = [4, 16], strides = [1, 1]} : vector<4x52xf32> to vector<4x16xf32>
    %13 = vector.extract_strided_slice %5 {offsets = [0, 28], sizes = [4, 16], strides = [1, 1]} : vector<4x52xf32> to vector<4x16xf32>
    %14 = tpu.concatenate %12, %13 in 1 : vector<4x16xf32>, vector<4x16xf32> -> vector<4x32xf32>
    %15 = vector.extract_strided_slice %5 {offsets = [0, 3], sizes = [4, 16], strides = [1, 1]} : vector<4x52xf32> to vector<4x16xf32>
    %16 = vector.extract_strided_slice %5 {offsets = [0, 29], sizes = [4, 16], strides = [1, 1]} : vector<4x52xf32> to vector<4x16xf32>
    %17 = tpu.concatenate %15, %16 in 1 : vector<4x16xf32>, vector<4x16xf32> -> vector<4x32xf32>
    %18 = vector.extract_strided_slice %5 {offsets = [0, 4], sizes = [4, 16], strides = [1, 1]} : vector<4x52xf32> to vector<4x16xf32>
    %19 = vector.extract_strided_slice %5 {offsets = [0, 30], sizes = [4, 16], strides = [1, 1]} : vector<4x52xf32> to vector<4x16xf32>
    %20 = tpu.concatenate %18, %19 in 1 : vector<4x16xf32>, vector<4x16xf32> -> vector<4x32xf32>
    %21 = vector.extract_strided_slice %5 {offsets = [0, 5], sizes = [4, 16], strides = [1, 1]} : vector<4x52xf32> to vector<4x16xf32>
    %22 = vector.extract_strided_slice %5 {offsets = [0, 31], sizes = [4, 16], strides = [1, 1]} : vector<4x52xf32> to vector<4x16xf32>
    %23 = tpu.concatenate %21, %22 in 1 : vector<4x16xf32>, vector<4x16xf32> -> vector<4x32xf32>
    %24 = vector.extract_strided_slice %5 {offsets = [0, 6], sizes = [4, 16], strides = [1, 1]} : vector<4x52xf32> to vector<4x16xf32>
    %25 = vector.extract_strided_slice %5 {offsets = [0, 32], sizes = [4, 16], strides = [1, 1]} : vector<4x52xf32> to vector<4x16xf32>
    %26 = tpu.concatenate %24, %25 in 1 : vector<4x16xf32>, vector<4x16xf32> -> vector<4x32xf32>
    %27 = vector.extract_strided_slice %5 {offsets = [0, 7], sizes = [4, 16], strides = [1, 1]} : vector<4x52xf32> to vector<4x16xf32>
    %28 = vector.extract_strided_slice %5 {offsets = [0, 33], sizes = [4, 16], strides = [1, 1]} : vector<4x52xf32> to vector<4x16xf32>
    %29 = tpu.concatenate %27, %28 in 1 : vector<4x16xf32>, vector<4x16xf32> -> vector<4x32xf32>
    %30 = vector.extract_strided_slice %5 {offsets = [0, 8], sizes = [4, 16], strides = [1, 1]} : vector<4x52xf32> to vector<4x16xf32>
    %31 = vector.extract_strided_slice %5 {offsets = [0, 34], sizes = [4, 16], strides = [1, 1]} : vector<4x52xf32> to vector<4x16xf32>
    %32 = tpu.concatenate %30, %31 in 1 : vector<4x16xf32>, vector<4x16xf32> -> vector<4x32xf32>
    %33 = vector.extract_strided_slice %5 {offsets = [0, 9], sizes = [4, 16], strides = [1, 1]} : vector<4x52xf32> to vector<4x16xf32>
    %34 = vector.extract_strided_slice %5 {offsets = [0, 35], sizes = [4, 16], strides = [1, 1]} : vector<4x52xf32> to vector<4x16xf32>
    %35 = tpu.concatenate %33, %34 in 1 : vector<4x16xf32>, vector<4x16xf32> -> vector<4x32xf32>
    %36 = vector.extract_strided_slice %5 {offsets = [0, 10], sizes = [4, 16], strides = [1, 1]} : vector<4x52xf32> to vector<4x16xf32>
    %37 = vector.extract_strided_slice %5 {offsets = [0, 36], sizes = [4, 16], strides = [1, 1]} : vector<4x52xf32> to vector<4x16xf32>
    %38 = tpu.concatenate %36, %37 in 1 : vector<4x16xf32>, vector<4x16xf32> -> vector<4x32xf32>
    %cst_4 = arith.constant 1.000000e+00 : f32
    %39 = vector.broadcast %cst_4 : f32 to vector<1x32xf32>
    %40 = tpu.concatenate %8, %11, %14, %17, %20, %23, %26, %29, %32, %35, %38, %39 in 0 : vector<4x32xf32>, vector<4x32xf32>, vector<4x32xf32>, vector<4x32xf32>, vector<4x32xf32>, vector<4x32xf32>, vector<4x32xf32>, vector<4x32xf32>, vector<4x32xf32>, vector<4x32xf32>, vector<4x32xf32>, vector<1x32xf32> -> vector<45x32xf32>
    %c0_5 = arith.constant 0 : index
    %c0_6 = arith.constant 0 : index
    %41 = vector.load %arg2[%c0_5, %c0_6] : memref<64x2176xf32, #tpu.memory_space<vmem>>, vector<16x45xf32>
    %cst_7 = arith.constant dense<0.000000e+00> : vector<16x32xf32>
    %42 = tpu.matmul %41, %40, %cst_7 {dimension_numbers = #tpu.dot_dimension_numbers<[1], [0], [0], [1], [0, 0, 1, 1], [], []>} : vector<16x45xf32>, vector<45x32xf32>, vector<16x32xf32> -> vector<16x32xf32>
    %cst_8 = arith.constant 0.000000e+00 : f32
    %43 = vector.broadcast %cst_8 : f32 to vector<16x32xf32>
    %44 = arith.maximumf %42, %43 : vector<16x32xf32>
    %c0_9 = arith.constant 0 : index
    %c128 = arith.constant 128 : index
    %45 = vector.load %arg2[%c0_9, %c128] : memref<64x2176xf32, #tpu.memory_space<vmem>>, vector<32x28xf32>
    %cst_10 = arith.constant dense<0.000000e+00> : vector<16x28xf32>
    %46 = tpu.matmul %44, %45, %cst_10 {dimension_numbers = #tpu.dot_dimension_numbers<[1], [0], [0], [1], [0, 0, 1, 1], [], []>} : vector<16x32xf32>, vector<32x28xf32>, vector<16x28xf32> -> vector<16x28xf32>
    %c0_11 = arith.constant 0 : index
    %c256 = arith.constant 256 : index
    %47 = vector.load %arg2[%c0_11, %c256] : memref<64x2176xf32, #tpu.memory_space<vmem>>, vector<32x28xf32>
    %cst_12 = arith.constant dense<0.000000e+00> : vector<16x28xf32>
    %48 = tpu.matmul %44, %47, %cst_12 {dimension_numbers = #tpu.dot_dimension_numbers<[1], [0], [0], [1], [0, 0, 1, 1], [], []>} : vector<16x32xf32>, vector<32x28xf32>, vector<16x28xf32> -> vector<16x28xf32>
    %49 = arith.maximumf %46, %48 : vector<16x28xf32>
    %50 = vector.extract_strided_slice %49 {offsets = [0, 0], sizes = [16, 8], strides = [1, 1]} : vector<16x28xf32> to vector<16x8xf32>
    %51 = vector.extract_strided_slice %49 {offsets = [0, 14], sizes = [16, 8], strides = [1, 1]} : vector<16x28xf32> to vector<16x8xf32>
    %52 = tpu.concatenate %50, %51 in 1 : vector<16x8xf32>, vector<16x8xf32> -> vector<16x16xf32>
    %53 = vector.extract_strided_slice %49 {offsets = [0, 1], sizes = [16, 8], strides = [1, 1]} : vector<16x28xf32> to vector<16x8xf32>
    %54 = vector.extract_strided_slice %49 {offsets = [0, 15], sizes = [16, 8], strides = [1, 1]} : vector<16x28xf32> to vector<16x8xf32>
    %55 = tpu.concatenate %53, %54 in 1 : vector<16x8xf32>, vector<16x8xf32> -> vector<16x16xf32>
    %56 = vector.extract_strided_slice %49 {offsets = [0, 2], sizes = [16, 8], strides = [1, 1]} : vector<16x28xf32> to vector<16x8xf32>
    %57 = vector.extract_strided_slice %49 {offsets = [0, 16], sizes = [16, 8], strides = [1, 1]} : vector<16x28xf32> to vector<16x8xf32>
    %58 = tpu.concatenate %56, %57 in 1 : vector<16x8xf32>, vector<16x8xf32> -> vector<16x16xf32>
    %59 = vector.extract_strided_slice %49 {offsets = [0, 3], sizes = [16, 8], strides = [1, 1]} : vector<16x28xf32> to vector<16x8xf32>
    %60 = vector.extract_strided_slice %49 {offsets = [0, 17], sizes = [16, 8], strides = [1, 1]} : vector<16x28xf32> to vector<16x8xf32>
    %61 = tpu.concatenate %59, %60 in 1 : vector<16x8xf32>, vector<16x8xf32> -> vector<16x16xf32>
    %62 = vector.extract_strided_slice %49 {offsets = [0, 4], sizes = [16, 8], strides = [1, 1]} : vector<16x28xf32> to vector<16x8xf32>
    %63 = vector.extract_strided_slice %49 {offsets = [0, 18], sizes = [16, 8], strides = [1, 1]} : vector<16x28xf32> to vector<16x8xf32>
    %64 = tpu.concatenate %62, %63 in 1 : vector<16x8xf32>, vector<16x8xf32> -> vector<16x16xf32>
    %65 = vector.extract_strided_slice %49 {offsets = [0, 5], sizes = [16, 8], strides = [1, 1]} : vector<16x28xf32> to vector<16x8xf32>
    %66 = vector.extract_strided_slice %49 {offsets = [0, 19], sizes = [16, 8], strides = [1, 1]} : vector<16x28xf32> to vector<16x8xf32>
    %67 = tpu.concatenate %65, %66 in 1 : vector<16x8xf32>, vector<16x8xf32> -> vector<16x16xf32>
    %68 = vector.extract_strided_slice %49 {offsets = [0, 6], sizes = [16, 8], strides = [1, 1]} : vector<16x28xf32> to vector<16x8xf32>
    %69 = vector.extract_strided_slice %49 {offsets = [0, 20], sizes = [16, 8], strides = [1, 1]} : vector<16x28xf32> to vector<16x8xf32>
    %70 = tpu.concatenate %68, %69 in 1 : vector<16x8xf32>, vector<16x8xf32> -> vector<16x16xf32>
    %cst_13 = arith.constant 1.000000e+00 : f32
    %71 = vector.broadcast %cst_13 : f32 to vector<1x16xf32>
    %72 = tpu.concatenate %52, %55, %58, %61, %64, %67, %70, %71 in 0 : vector<16x16xf32>, vector<16x16xf32>, vector<16x16xf32>, vector<16x16xf32>, vector<16x16xf32>, vector<16x16xf32>, vector<16x16xf32>, vector<1x16xf32> -> vector<113x16xf32>
    %c0_14 = arith.constant 0 : index
    %c384 = arith.constant 384 : index
    %73 = vector.load %arg2[%c0_14, %c384] : memref<64x2176xf32, #tpu.memory_space<vmem>>, vector<32x113xf32>
    %cst_15 = arith.constant dense<0.000000e+00> : vector<32x16xf32>
    %74 = tpu.matmul %73, %72, %cst_15 {dimension_numbers = #tpu.dot_dimension_numbers<[1], [0], [0], [1], [0, 0, 1, 1], [], []>} : vector<32x113xf32>, vector<113x16xf32>, vector<32x16xf32> -> vector<32x16xf32>
    %cst_16 = arith.constant 0.000000e+00 : f32
    %75 = vector.broadcast %cst_16 : f32 to vector<32x16xf32>
    %76 = arith.maximumf %74, %75 : vector<32x16xf32>
    %c0_17 = arith.constant 0 : index
    %c512 = arith.constant 512 : index
    %77 = vector.load %arg2[%c0_17, %c512] : memref<64x2176xf32, #tpu.memory_space<vmem>>, vector<16x12xf32>
    %cst_18 = arith.constant dense<0.000000e+00> : vector<32x12xf32>
    %78 = tpu.matmul %76, %77, %cst_18 {dimension_numbers = #tpu.dot_dimension_numbers<[1], [0], [0], [1], [0, 0, 1, 1], [], []>} : vector<32x16xf32>, vector<16x12xf32>, vector<32x12xf32> -> vector<32x12xf32>
    %c0_19 = arith.constant 0 : index
    %c640 = arith.constant 640 : index
    %79 = vector.load %arg2[%c0_19, %c640] : memref<64x2176xf32, #tpu.memory_space<vmem>>, vector<16x12xf32>
    %cst_20 = arith.constant dense<0.000000e+00> : vector<32x12xf32>
    %80 = tpu.matmul %76, %79, %cst_20 {dimension_numbers = #tpu.dot_dimension_numbers<[1], [0], [0], [1], [0, 0, 1, 1], [], []>} : vector<32x16xf32>, vector<16x12xf32>, vector<32x12xf32> -> vector<32x12xf32>
    %81 = arith.maximumf %78, %80 : vector<32x12xf32>
    %82 = vector.extract_strided_slice %81 {offsets = [0, 0], sizes = [32, 4], strides = [1, 1]} : vector<32x12xf32> to vector<32x4xf32>
    %83 = vector.extract_strided_slice %81 {offsets = [0, 6], sizes = [32, 4], strides = [1, 1]} : vector<32x12xf32> to vector<32x4xf32>
    %84 = tpu.concatenate %82, %83 in 1 : vector<32x4xf32>, vector<32x4xf32> -> vector<32x8xf32>
    %85 = vector.extract_strided_slice %81 {offsets = [0, 1], sizes = [32, 4], strides = [1, 1]} : vector<32x12xf32> to vector<32x4xf32>
    %86 = vector.extract_strided_slice %81 {offsets = [0, 7], sizes = [32, 4], strides = [1, 1]} : vector<32x12xf32> to vector<32x4xf32>
    %87 = tpu.concatenate %85, %86 in 1 : vector<32x4xf32>, vector<32x4xf32> -> vector<32x8xf32>
    %88 = vector.extract_strided_slice %81 {offsets = [0, 2], sizes = [32, 4], strides = [1, 1]} : vector<32x12xf32> to vector<32x4xf32>
    %89 = vector.extract_strided_slice %81 {offsets = [0, 8], sizes = [32, 4], strides = [1, 1]} : vector<32x12xf32> to vector<32x4xf32>
    %90 = tpu.concatenate %88, %89 in 1 : vector<32x4xf32>, vector<32x4xf32> -> vector<32x8xf32>
    %cst_21 = arith.constant 1.000000e+00 : f32
    %91 = vector.broadcast %cst_21 : f32 to vector<1x8xf32>
    %92 = tpu.concatenate %84, %87, %90, %91 in 0 : vector<32x8xf32>, vector<32x8xf32>, vector<32x8xf32>, vector<1x8xf32> -> vector<97x8xf32>
    %c0_22 = arith.constant 0 : index
    %c768 = arith.constant 768 : index
    %93 = vector.load %arg2[%c0_22, %c768] : memref<64x2176xf32, #tpu.memory_space<vmem>>, vector<16x97xf32>
    %cst_23 = arith.constant dense<0.000000e+00> : vector<16x8xf32>
    %94 = tpu.matmul %93, %92, %cst_23 {dimension_numbers = #tpu.dot_dimension_numbers<[1], [0], [0], [1], [0, 0, 1, 1], [], []>} : vector<16x97xf32>, vector<97x8xf32>, vector<16x8xf32> -> vector<16x8xf32>
    %cst_24 = arith.constant 0.000000e+00 : f32
    %95 = vector.broadcast %cst_24 : f32 to vector<16x8xf32>
    %96 = arith.maximumf %94, %95 : vector<16x8xf32>
    %97 = vector.extract_strided_slice %96 {offsets = [0, 0], sizes = [16, 1], strides = [1, 1]} : vector<16x8xf32> to vector<16x1xf32>
    %98 = vector.extract_strided_slice %96 {offsets = [0, 4], sizes = [16, 1], strides = [1, 1]} : vector<16x8xf32> to vector<16x1xf32>
    %99 = tpu.concatenate %97, %98 in 1 : vector<16x1xf32>, vector<16x1xf32> -> vector<16x2xf32>
    %100 = vector.extract_strided_slice %96 {offsets = [0, 1], sizes = [16, 1], strides = [1, 1]} : vector<16x8xf32> to vector<16x1xf32>
    %101 = vector.extract_strided_slice %96 {offsets = [0, 5], sizes = [16, 1], strides = [1, 1]} : vector<16x8xf32> to vector<16x1xf32>
    %102 = tpu.concatenate %100, %101 in 1 : vector<16x1xf32>, vector<16x1xf32> -> vector<16x2xf32>
    %103 = vector.extract_strided_slice %96 {offsets = [0, 2], sizes = [16, 1], strides = [1, 1]} : vector<16x8xf32> to vector<16x1xf32>
    %104 = vector.extract_strided_slice %96 {offsets = [0, 6], sizes = [16, 1], strides = [1, 1]} : vector<16x8xf32> to vector<16x1xf32>
    %105 = tpu.concatenate %103, %104 in 1 : vector<16x1xf32>, vector<16x1xf32> -> vector<16x2xf32>
    %106 = vector.extract_strided_slice %96 {offsets = [0, 3], sizes = [16, 1], strides = [1, 1]} : vector<16x8xf32> to vector<16x1xf32>
    %107 = vector.extract_strided_slice %96 {offsets = [0, 7], sizes = [16, 1], strides = [1, 1]} : vector<16x8xf32> to vector<16x1xf32>
    %108 = tpu.concatenate %106, %107 in 1 : vector<16x1xf32>, vector<16x1xf32> -> vector<16x2xf32>
    %cst_25 = arith.constant 1.000000e+00 : f32
    %109 = vector.broadcast %cst_25 : f32 to vector<1x2xf32>
    %110 = tpu.concatenate %99, %102, %105, %108, %109 in 0 : vector<16x2xf32>, vector<16x2xf32>, vector<16x2xf32>, vector<16x2xf32>, vector<1x2xf32> -> vector<65x2xf32>
    %c0_26 = arith.constant 0 : index
    %c896 = arith.constant 896 : index
    %111 = vector.load %arg2[%c0_26, %c896] : memref<64x2176xf32, #tpu.memory_space<vmem>>, vector<32x65xf32>
    %cst_27 = arith.constant dense<0.000000e+00> : vector<32x2xf32>
    %112 = tpu.matmul %111, %110, %cst_27 {dimension_numbers = #tpu.dot_dimension_numbers<[1], [0], [0], [1], [0, 0, 1, 1], [], []>} : vector<32x65xf32>, vector<65x2xf32>, vector<32x2xf32> -> vector<32x2xf32>
    %113 = arith.negf %112 : vector<32x2xf32>
    %114 = math.exp %113 : vector<32x2xf32>
    %cst_28 = arith.constant 1.000000e+00 : f32
    %115 = vector.broadcast %cst_28 : f32 to vector<32x2xf32>
    %116 = arith.addf %115, %114 : vector<32x2xf32>
    %117 = arith.divf %115, %116 : vector<32x2xf32>
    %cst_29 = arith.constant 1.000000e+00 : f32
    %118 = vector.broadcast %cst_29 : f32 to vector<1x2xf32>
    %119 = tpu.concatenate %117, %118 in 0 : vector<32x2xf32>, vector<1x2xf32> -> vector<33x2xf32>
    %c0_30 = arith.constant 0 : index
    %c1024 = arith.constant 1024 : index
    %120 = vector.load %arg2[%c0_30, %c1024] : memref<64x2176xf32, #tpu.memory_space<vmem>>, vector<16x33xf32>
    %cst_31 = arith.constant dense<0.000000e+00> : vector<16x2xf32>
    %121 = tpu.matmul %120, %119, %cst_31 {dimension_numbers = #tpu.dot_dimension_numbers<[1], [0], [0], [1], [0, 0, 1, 1], [], []>} : vector<16x33xf32>, vector<33x2xf32>, vector<16x2xf32> -> vector<16x2xf32>
    %c0_32 = arith.constant 0 : index
    %c0_33 = arith.constant 0 : index
    %122 = vector.load %arg4[%c0_32, %c0_33] : memref<16x2xf32, #tpu.memory_space<vmem>>, vector<16x2xf32>
    tpu.vector_store %arg4[%c0_32, %c0_33], %121 {strides = array<i32>} : memref<16x2xf32, #tpu.memory_space<vmem>>, vector<16x2xf32>,
    %123 = vector.extract_strided_slice %121 {offsets = [0, 0], sizes = [8, 2], strides = [1, 1]} : vector<16x2xf32> to vector<8x2xf32>
    %124 = vector.extract_strided_slice %121 {offsets = [8, 0], sizes = [8, 2], strides = [1, 1]} : vector<16x2xf32> to vector<8x2xf32>
    %cst_34 = arith.constant 5.000000e-01 : f32
    %125 = vector.broadcast %cst_34 : f32 to vector<8x2xf32>
    %126 = arith.mulf %125, %124 : vector<8x2xf32>
    %127 = math.exp %126 : vector<8x2xf32>
    %c0_35 = arith.constant 0 : index
    %c0_36 = arith.constant 0 : index
    %128 = vector.load %arg1[%c0_35, %c0_36] : memref<8x2xf32, #tpu.memory_space<vmem>>, vector<8x2xf32>
    %129 = arith.mulf %127, %128 : vector<8x2xf32>
    %130 = arith.addf %123, %129 : vector<8x2xf32>
    %c0_37 = arith.constant 0 : index
    %c1152 = arith.constant 1152 : index
    %131 = vector.load %arg2[%c0_37, %c1152] : memref<64x2176xf32, #tpu.memory_space<vmem>>, vector<64x8xf32>
    %cst_38 = arith.constant dense<0.000000e+00> : vector<64x2xf32>
    %132 = tpu.matmul %131, %130, %cst_38 {dimension_numbers = #tpu.dot_dimension_numbers<[1], [0], [0], [1], [0, 0, 1, 1], [], []>} : vector<64x8xf32>, vector<8x2xf32>, vector<64x2xf32> -> vector<64x2xf32>
    %cst_39 = arith.constant 0.000000e+00 : f32
    %133 = vector.broadcast %cst_39 : f32 to vector<16x1xf32>
    %134 = vector.extract_strided_slice %132 {offsets = [0, 0], sizes = [16, 1], strides = [1, 1]} : vector<64x2xf32> to vector<16x1xf32>
    %135 = vector.extract_strided_slice %132 {offsets = [16, 0], sizes = [16, 1], strides = [1, 1]} : vector<64x2xf32> to vector<16x1xf32>
    %136 = vector.extract_strided_slice %132 {offsets = [32, 0], sizes = [16, 1], strides = [1, 1]} : vector<64x2xf32> to vector<16x1xf32>
    %137 = vector.extract_strided_slice %132 {offsets = [48, 0], sizes = [16, 1], strides = [1, 1]} : vector<64x2xf32> to vector<16x1xf32>
    %138 = vector.extract_strided_slice %132 {offsets = [0, 1], sizes = [16, 1], strides = [1, 1]} : vector<64x2xf32> to vector<16x1xf32>
    %139 = vector.extract_strided_slice %132 {offsets = [16, 1], sizes = [16, 1], strides = [1, 1]} : vector<64x2xf32> to vector<16x1xf32>
    %140 = vector.extract_strided_slice %132 {offsets = [32, 1], sizes = [16, 1], strides = [1, 1]} : vector<64x2xf32> to vector<16x1xf32>
    %141 = vector.extract_strided_slice %132 {offsets = [48, 1], sizes = [16, 1], strides = [1, 1]} : vector<64x2xf32> to vector<16x1xf32>
    %142 = tpu.concatenate %133, %134, %134, %135, %135, %136, %136, %137, %137, %133, %133, %138, %138, %139, %139, %140 in 1 : vector<16x1xf32>, vector<16x1xf32>, vector<16x1xf32>, vector<16x1xf32>, vector<16x1xf32>, vector<16x1xf32>, vector<16x1xf32>, vector<16x1xf32>, vector<16x1xf32>, vector<16x1xf32>, vector<16x1xf32>, vector<16x1xf32>, vector<16x1xf32>, vector<16x1xf32>, vector<16x1xf32>, vector<16x1xf32> -> vector<16x16xf32>
    %143 = tpu.concatenate %140, %141, %141, %133 in 1 : vector<16x1xf32>, vector<16x1xf32>, vector<16x1xf32>, vector<16x1xf32> -> vector<16x4xf32>
    %144 = tpu.concatenate %142, %143 in 1 : vector<16x16xf32>, vector<16x4xf32> -> vector<16x20xf32>
    %c0_40 = arith.constant 0 : index
    %c1280 = arith.constant 1280 : index
    %145 = vector.load %arg2[%c0_40, %c1280] : memref<64x2176xf32, #tpu.memory_space<vmem>>, vector<16x20xf32>
    %146 = arith.addf %144, %145 : vector<16x20xf32>
    %147 = vector.extract_strided_slice %146 {offsets = [0, 0], sizes = [16, 8], strides = [1, 1]} : vector<16x20xf32> to vector<16x8xf32>
    %148 = vector.extract_strided_slice %146 {offsets = [0, 10], sizes = [16, 8], strides = [1, 1]} : vector<16x20xf32> to vector<16x8xf32>
    %149 = tpu.concatenate %147, %148 in 1 : vector<16x8xf32>, vector<16x8xf32> -> vector<16x16xf32>
    %150 = vector.extract_strided_slice %146 {offsets = [0, 1], sizes = [16, 8], strides = [1, 1]} : vector<16x20xf32> to vector<16x8xf32>
    %151 = vector.extract_strided_slice %146 {offsets = [0, 11], sizes = [16, 8], strides = [1, 1]} : vector<16x20xf32> to vector<16x8xf32>
    %152 = tpu.concatenate %150, %151 in 1 : vector<16x8xf32>, vector<16x8xf32> -> vector<16x16xf32>
    %153 = vector.extract_strided_slice %146 {offsets = [0, 2], sizes = [16, 8], strides = [1, 1]} : vector<16x20xf32> to vector<16x8xf32>
    %154 = vector.extract_strided_slice %146 {offsets = [0, 12], sizes = [16, 8], strides = [1, 1]} : vector<16x20xf32> to vector<16x8xf32>
    %155 = tpu.concatenate %153, %154 in 1 : vector<16x8xf32>, vector<16x8xf32> -> vector<16x16xf32>
    %cst_41 = arith.constant 1.000000e+00 : f32
    %156 = vector.broadcast %cst_41 : f32 to vector<1x16xf32>
    %157 = tpu.concatenate %149, %152, %155, %156 in 0 : vector<16x16xf32>, vector<16x16xf32>, vector<16x16xf32>, vector<1x16xf32> -> vector<49x16xf32>
    %c0_42 = arith.constant 0 : index
    %c1408 = arith.constant 1408 : index
    %158 = vector.load %arg2[%c0_42, %c1408] : memref<64x2176xf32, #tpu.memory_space<vmem>>, vector<32x49xf32>
    %cst_43 = arith.constant dense<0.000000e+00> : vector<32x16xf32>
    %159 = tpu.matmul %158, %157, %cst_43 {dimension_numbers = #tpu.dot_dimension_numbers<[1], [0], [0], [1], [0, 0, 1, 1], [], []>} : vector<32x49xf32>, vector<49x16xf32>, vector<32x16xf32> -> vector<32x16xf32>
    %cst_44 = arith.constant 0.000000e+00 : f32
    %160 = vector.broadcast %cst_44 : f32 to vector<32x16xf32>
    %161 = arith.maximumf %159, %160 : vector<32x16xf32>
    %c0_45 = arith.constant 0 : index
    %c1536 = arith.constant 1536 : index
    %162 = vector.load %arg2[%c0_45, %c1536] : memref<64x2176xf32, #tpu.memory_space<vmem>>, vector<16x44xf32>
    %cst_46 = arith.constant dense<0.000000e+00> : vector<32x44xf32>
    %163 = tpu.matmul %161, %162, %cst_46 {dimension_numbers = #tpu.dot_dimension_numbers<[1], [0], [0], [1], [0, 0, 1, 1], [], []>} : vector<32x16xf32>, vector<16x44xf32>, vector<32x44xf32> -> vector<32x44xf32>
    %164 = vector.extract_strided_slice %163 {offsets = [0, 0], sizes = [32, 16], strides = [1, 1]} : vector<32x44xf32> to vector<32x16xf32>
    %165 = vector.extract_strided_slice %163 {offsets = [0, 22], sizes = [32, 16], strides = [1, 1]} : vector<32x44xf32> to vector<32x16xf32>
    %166 = tpu.concatenate %164, %165 in 1 : vector<32x16xf32>, vector<32x16xf32> -> vector<32x32xf32>
    %167 = vector.extract_strided_slice %163 {offsets = [0, 1], sizes = [32, 16], strides = [1, 1]} : vector<32x44xf32> to vector<32x16xf32>
    %168 = vector.extract_strided_slice %163 {offsets = [0, 23], sizes = [32, 16], strides = [1, 1]} : vector<32x44xf32> to vector<32x16xf32>
    %169 = tpu.concatenate %167, %168 in 1 : vector<32x16xf32>, vector<32x16xf32> -> vector<32x32xf32>
    %170 = vector.extract_strided_slice %163 {offsets = [0, 2], sizes = [32, 16], strides = [1, 1]} : vector<32x44xf32> to vector<32x16xf32>
    %171 = vector.extract_strided_slice %163 {offsets = [0, 24], sizes = [32, 16], strides = [1, 1]} : vector<32x44xf32> to vector<32x16xf32>
    %172 = tpu.concatenate %170, %171 in 1 : vector<32x16xf32>, vector<32x16xf32> -> vector<32x32xf32>
    %173 = vector.extract_strided_slice %163 {offsets = [0, 3], sizes = [32, 16], strides = [1, 1]} : vector<32x44xf32> to vector<32x16xf32>
    %174 = vector.extract_strided_slice %163 {offsets = [0, 25], sizes = [32, 16], strides = [1, 1]} : vector<32x44xf32> to vector<32x16xf32>
    %175 = tpu.concatenate %173, %174 in 1 : vector<32x16xf32>, vector<32x16xf32> -> vector<32x32xf32>
    %176 = vector.extract_strided_slice %163 {offsets = [0, 4], sizes = [32, 16], strides = [1, 1]} : vector<32x44xf32> to vector<32x16xf32>
    %177 = vector.extract_strided_slice %163 {offsets = [0, 26], sizes = [32, 16], strides = [1, 1]} : vector<32x44xf32> to vector<32x16xf32>
    %178 = tpu.concatenate %176, %177 in 1 : vector<32x16xf32>, vector<32x16xf32> -> vector<32x32xf32>
    %179 = vector.extract_strided_slice %163 {offsets = [0, 5], sizes = [32, 16], strides = [1, 1]} : vector<32x44xf32> to vector<32x16xf32>
    %180 = vector.extract_strided_slice %163 {offsets = [0, 27], sizes = [32, 16], strides = [1, 1]} : vector<32x44xf32> to vector<32x16xf32>
    %181 = tpu.concatenate %179, %180 in 1 : vector<32x16xf32>, vector<32x16xf32> -> vector<32x32xf32>
    %182 = vector.extract_strided_slice %163 {offsets = [0, 6], sizes = [32, 16], strides = [1, 1]} : vector<32x44xf32> to vector<32x16xf32>
    %183 = vector.extract_strided_slice %163 {offsets = [0, 28], sizes = [32, 16], strides = [1, 1]} : vector<32x44xf32> to vector<32x16xf32>
    %184 = tpu.concatenate %182, %183 in 1 : vector<32x16xf32>, vector<32x16xf32> -> vector<32x32xf32>
    %cst_47 = arith.constant 1.000000e+00 : f32
    %185 = vector.broadcast %cst_47 : f32 to vector<1x32xf32>
    %186 = tpu.concatenate %166, %169, %172, %175, %178, %181, %184, %185 in 0 : vector<32x32xf32>, vector<32x32xf32>, vector<32x32xf32>, vector<32x32xf32>, vector<32x32xf32>, vector<32x32xf32>, vector<32x32xf32>, vector<1x32xf32> -> vector<225x32xf32>
    %c0_48 = arith.constant 0 : index
    %c1664 = arith.constant 1664 : index
    %187 = vector.load %arg2[%c0_48, %c1664] : memref<64x2176xf32, #tpu.memory_space<vmem>>, vector<16x225xf32>
    %cst_49 = arith.constant dense<0.000000e+00> : vector<16x32xf32>
    %188 = tpu.matmul %187, %186, %cst_49 {dimension_numbers = #tpu.dot_dimension_numbers<[1], [0], [0], [1], [0, 0, 1, 1], [], []>} : vector<16x225xf32>, vector<225x32xf32>, vector<16x32xf32> -> vector<16x32xf32>
    %cst_50 = arith.constant 0.000000e+00 : f32
    %189 = vector.broadcast %cst_50 : f32 to vector<16x32xf32>
    %190 = arith.maximumf %188, %189 : vector<16x32xf32>
    %cst_51 = arith.constant 0.000000e+00 : f32
    %191 = vector.broadcast %cst_51 : f32 to vector<16x5xf32>
    %192 = vector.extract_strided_slice %190 {offsets = [0, 0], sizes = [16, 16], strides = [1, 1]} : vector<16x32xf32> to vector<16x16xf32>
    %193 = vector.extract_strided_slice %190 {offsets = [0, 16], sizes = [16, 16], strides = [1, 1]} : vector<16x32xf32> to vector<16x16xf32>
    %194 = tpu.concatenate %191, %192, %191, %191, %193, %191 in 1 : vector<16x5xf32>, vector<16x16xf32>, vector<16x5xf32>, vector<16x5xf32>, vector<16x16xf32>, vector<16x5xf32> -> vector<16x52xf32>
    %195 = vector.extract_strided_slice %194 {offsets = [0, 0], sizes = [16, 16], strides = [1, 1]} : vector<16x52xf32> to vector<16x16xf32>
    %196 = vector.extract_strided_slice %194 {offsets = [0, 26], sizes = [16, 16], strides = [1, 1]} : vector<16x52xf32> to vector<16x16xf32>
    %197 = tpu.concatenate %195, %196 in 1 : vector<16x16xf32>, vector<16x16xf32> -> vector<16x32xf32>
    %198 = vector.extract_strided_slice %194 {offsets = [0, 1], sizes = [16, 16], strides = [1, 1]} : vector<16x52xf32> to vector<16x16xf32>
    %199 = vector.extract_strided_slice %194 {offsets = [0, 27], sizes = [16, 16], strides = [1, 1]} : vector<16x52xf32> to vector<16x16xf32>
    %200 = tpu.concatenate %198, %199 in 1 : vector<16x16xf32>, vector<16x16xf32> -> vector<16x32xf32>
    %201 = vector.extract_strided_slice %194 {offsets = [0, 2], sizes = [16, 16], strides = [1, 1]} : vector<16x52xf32> to vector<16x16xf32>
    %202 = vector.extract_strided_slice %194 {offsets = [0, 28], sizes = [16, 16], strides = [1, 1]} : vector<16x52xf32> to vector<16x16xf32>
    %203 = tpu.concatenate %201, %202 in 1 : vector<16x16xf32>, vector<16x16xf32> -> vector<16x32xf32>
    %204 = vector.extract_strided_slice %194 {offsets = [0, 3], sizes = [16, 16], strides = [1, 1]} : vector<16x52xf32> to vector<16x16xf32>
    %205 = vector.extract_strided_slice %194 {offsets = [0, 29], sizes = [16, 16], strides = [1, 1]} : vector<16x52xf32> to vector<16x16xf32>
    %206 = tpu.concatenate %204, %205 in 1 : vector<16x16xf32>, vector<16x16xf32> -> vector<16x32xf32>
    %207 = vector.extract_strided_slice %194 {offsets = [0, 4], sizes = [16, 16], strides = [1, 1]} : vector<16x52xf32> to vector<16x16xf32>
    %208 = vector.extract_strided_slice %194 {offsets = [0, 30], sizes = [16, 16], strides = [1, 1]} : vector<16x52xf32> to vector<16x16xf32>
    %209 = tpu.concatenate %207, %208 in 1 : vector<16x16xf32>, vector<16x16xf32> -> vector<16x32xf32>
    %210 = vector.extract_strided_slice %194 {offsets = [0, 5], sizes = [16, 16], strides = [1, 1]} : vector<16x52xf32> to vector<16x16xf32>
    %211 = vector.extract_strided_slice %194 {offsets = [0, 31], sizes = [16, 16], strides = [1, 1]} : vector<16x52xf32> to vector<16x16xf32>
    %212 = tpu.concatenate %210, %211 in 1 : vector<16x16xf32>, vector<16x16xf32> -> vector<16x32xf32>
    %213 = vector.extract_strided_slice %194 {offsets = [0, 6], sizes = [16, 16], strides = [1, 1]} : vector<16x52xf32> to vector<16x16xf32>
    %214 = vector.extract_strided_slice %194 {offsets = [0, 32], sizes = [16, 16], strides = [1, 1]} : vector<16x52xf32> to vector<16x16xf32>
    %215 = tpu.concatenate %213, %214 in 1 : vector<16x16xf32>, vector<16x16xf32> -> vector<16x32xf32>
    %216 = vector.extract_strided_slice %194 {offsets = [0, 7], sizes = [16, 16], strides = [1, 1]} : vector<16x52xf32> to vector<16x16xf32>
    %217 = vector.extract_strided_slice %194 {offsets = [0, 33], sizes = [16, 16], strides = [1, 1]} : vector<16x52xf32> to vector<16x16xf32>
    %218 = tpu.concatenate %216, %217 in 1 : vector<16x16xf32>, vector<16x16xf32> -> vector<16x32xf32>
    %219 = vector.extract_strided_slice %194 {offsets = [0, 8], sizes = [16, 16], strides = [1, 1]} : vector<16x52xf32> to vector<16x16xf32>
    %220 = vector.extract_strided_slice %194 {offsets = [0, 34], sizes = [16, 16], strides = [1, 1]} : vector<16x52xf32> to vector<16x16xf32>
    %221 = tpu.concatenate %219, %220 in 1 : vector<16x16xf32>, vector<16x16xf32> -> vector<16x32xf32>
    %222 = vector.extract_strided_slice %194 {offsets = [0, 9], sizes = [16, 16], strides = [1, 1]} : vector<16x52xf32> to vector<16x16xf32>
    %223 = vector.extract_strided_slice %194 {offsets = [0, 35], sizes = [16, 16], strides = [1, 1]} : vector<16x52xf32> to vector<16x16xf32>
    %224 = tpu.concatenate %222, %223 in 1 : vector<16x16xf32>, vector<16x16xf32> -> vector<16x32xf32>
    %225 = vector.extract_strided_slice %194 {offsets = [0, 10], sizes = [16, 16], strides = [1, 1]} : vector<16x52xf32> to vector<16x16xf32>
    %226 = vector.extract_strided_slice %194 {offsets = [0, 36], sizes = [16, 16], strides = [1, 1]} : vector<16x52xf32> to vector<16x16xf32>
    %227 = tpu.concatenate %225, %226 in 1 : vector<16x16xf32>, vector<16x16xf32> -> vector<16x32xf32>
    %cst_52 = arith.constant 1.000000e+00 : f32
    %228 = vector.broadcast %cst_52 : f32 to vector<1x32xf32>
    %229 = tpu.concatenate %197, %200, %203, %206, %209, %212, %215, %218, %221, %224, %227, %228 in 0 : vector<16x32xf32>, vector<16x32xf32>, vector<16x32xf32>, vector<16x32xf32>, vector<16x32xf32>, vector<16x32xf32>, vector<16x32xf32>, vector<16x32xf32>, vector<16x32xf32>, vector<16x32xf32>, vector<16x32xf32>, vector<1x32xf32> -> vector<177x32xf32>
    %c0_53 = arith.constant 0 : index
    %c1920 = arith.constant 1920 : index
    %230 = vector.load %arg2[%c0_53, %c1920] : memref<64x2176xf32, #tpu.memory_space<vmem>>, vector<4x177xf32>
    %cst_54 = arith.constant dense<0.000000e+00> : vector<4x32xf32>
    %231 = tpu.matmul %230, %229, %cst_54 {dimension_numbers = #tpu.dot_dimension_numbers<[1], [0], [0], [1], [0, 0, 1, 1], [], []>} : vector<4x177xf32>, vector<177x32xf32>, vector<4x32xf32> -> vector<4x32xf32>
    %c0_55 = arith.constant 0 : index
    %c0_56 = arith.constant 0 : index
    %232 = vector.load %arg3[%c0_55, %c0_56] : memref<4x32xf32, #tpu.memory_space<vmem>>, vector<4x32xf32>
    tpu.vector_store %arg3[%c0_55, %c0_56], %231 {strides = array<i32>} : memref<4x32xf32, #tpu.memory_space<vmem>>, vector<4x32xf32>,
    return
  }
}

</mosaic_0001>

<bundles_post_ra>
// kernel: vae_forward.1
= control target key start
LH: loop header
LB: loop body
LE: loop exit
PB: predicated region body
PF: predicated region fallthrough
CT: control target
= control target key end

     0   :  { %10 = vsyncpa [#allocation3], 0  ;;  %s3303_s15 = smov [#allocation2]   ;;  %s3806_s0 = inlined_call_operand.vmem [shape: f32[2,4,16], index: 0, kind: input, shape index: {}]   ;;  %s3807_s1 = inlined_call_operand.vmem [shape: f32[8,2], index: 1, kind: input, shape index: {}]   ;;  %s3808_s2 = inlined_call_operand.hbm [shape: f32[64,2176], index: 2, kind: input, shape index: {}]   ;;  %s3809_s3 = inlined_call_operand.vmem [shape: f32[4,32], index: 3, kind: output, shape index: {0}]   ;;  %s3810_s4 = inlined_call_operand.vmem [shape: f32[16,2], index: 4, kind: output, shape index: {1}]  }
   0x1   :  { %s20_s16 = sshll.u32 %s3303_s15, 4  ;;  %s3279_s19 = scalar_lea.hbm %s3808_s2, 17408  ;;  %s21_s16 = int_to_ptr.vmem [resolvable:$true] %s20_s16 }
   0x2   :  { %p3280_p0 = scmp.ne.s32.totalorder %s3808_s2, %s3279_s19  ;;  %p3283_p1 = scmp.lt.u32.totalorder %s3279_s19, %s3808_s2 }
   0x4   :  { %p3285_p2 = pnand %p3283_p1, %p3280_p0 }
   0x6   :  { %3288 = shalt.err (!%p3285_p2)
}
   0x7   :  { %s3289_s24 = scalar_lea.vmem %s21_s16, 17408  ;;  %p3294_p4 = scmp.lt.s32.totalorder %s21_s16, %s21_s16 }
   0x8   :  { %p3290_p3 = scmp.ne.s32.totalorder %s21_s16, %s3289_s24  ;;  %p3295_p5 = scmp.lt.s32.totalorder %s3289_s24, %s3289_s24 }
   0xa   :  { %p3296_p6 = por %p3295_p5, %p3294_p4 }
   0xc   :  { %p3297_p7 = pnand %p3296_p6, %p3290_p3 }
   0xe   :  { %3300 = shalt.err (!%p3297_p7)
}
   0xf   :  { %s3304_s25 = smov 2176   ;;  %s3305_s26 = smov 136  }
  0x10   :  { %26 = dma.hbm_to_vmem [thread:$0]  %s3808_s2, 17408, %s21_s16, [#allocation3], %s3304_s25, %s3304_s25, %s3305_s26  }
  0x11   :  { %3301 = dma.done.wait [#allocation3], 17408  }
  0x12   :  { %3302 = vsyncadd [#allocation3], 4294949888  ;;  %v30_v0 = vld [vmem:[%s3806_s0] sm:$0xf]  ;;  %s3306_s5 = smov 5   ;;  %s3307_s8 = smov 31  }
  0x13   :  { %34 = vrot.lane.b32.xlu0 %v30_v0, %s3306_s5  ;;  %v2258_v1 = vld [vmem:[%s3806_s0 + $0x4] sm:$0xf]  ;;  %vm41_vm0 = vcmask 39936   ;;  %vm43_vm1 = vcmask 171008   ;;  %vm45_vm2 = vcmask 211968   ;;  %vm3812_vm3 = vcmask 252928  }
  0x14   :  { %vm3811_vm4 = vcmask 384000   ;;  %s3308_s0 = smov 125   ;;  %s3309_s2 = smov 127   ;;  %v146_v9 = vld [vmem:[#allocation2] sm:$0xff]  ;;  %vm148_vm5 = vcmask 367616   ;;  %v322_v10 = vld [vmem:[#allocation2 + $0x10] sm:$0xff] }
  0x15   :  { %s3310_s9 = smov 118   ;;  %s3311_s10 = smov 117   ;;  %2440 = vmatprep.mubr.msk.f32.mxu0 %vm148_vm5, %v146_v9  ;;  %v323_v11 = vld [vmem:[#allocation2 + $0x98] sm:$0xff]  ;;  %vm55_vm6 = vcmask 130048   ;;  %vm139_vm7 = vcmask 1043456   ;;  %vm155_vm8 = vcmask 1044480  }
  0x16   :  { %s3312_s11 = smov 116   ;;  %s3313_s12 = smov 115   ;;  %v2653_v12 = vpack.c.bf16 %v323_v11, %v322_v10  ;;  %v236_v54 = vld [vmem:[#allocation2 + $0x8] sm:$0xff]  ;;  %v237_v55 = vld [vmem:[#allocation2 + $0x90] sm:$0xff]  ;;  %vm3328_vm9 = vmmov 1   ;;  %v238_v62 = vld [vmem:[#allocation2 + $0x118] sm:$0xff] }
  0x17   :  { %38 = vrot.lane.b32.xlu0 %v2258_v1, %s3307_s8  ;;  %s3314_s13 = smov 113   ;;  %s3315_s14 = smov 126   ;;  %vm2640_vm10 = vmpackc.low %vm155_vm8, %vm3328_vm9  ;;  %v2645_v60 = vpack.c.bf16 %v237_v55, %v236_v54  ;;  %v147_v61 = vld [vmem:[#allocation2 + $0x88] sm:$0xff]  ;;  %v239_v63 = vld [vmem:[#allocation2 + $0x1a0] sm:$0xff]  ;;  %vm240_vm11 = vcmask 261120   ;;  %vm496_vm12 = vcmask 924672  }
  0x18   :  { %s3316_s15 = smov 111   ;;  %s3317_s16 = smov 123   ;;  %2654 = vmatprep.subr.bf16.mxu1 %v2653_v12  ;;  %v324_v0 = vld [vmem:[#allocation2 + $0x120] sm:$0xff]  ;;  %v2649_v1 = vpack.c.bf16 %v239_v63, %v238_v62  ;;  %vm411_vm13 = vcmask 64512   ;;  %vm509_vm14 = vcmask 1040384   ;;  %vm859_vm15 = vcmask 793600  }
  0x19   :  { %s3318_s17 = smov 114   ;;  %s3319_s18 = smov 121   ;;  %2656 = vmatpush3.bf16.msra.mxu1 %v2653_v12  ;;  %vm951_vm8 = vcmask 7168   ;;  %vm1118_vm9 = vcmask 269312  }
  0x1a   :  { %s3320_s19 = smov 112   ;;  %s3321_s20 = smov 124  }
  0x1b   :  { %s3322_s21 = smov 109   ;;  %s3323_s22 = smov 122  }
  0x1c   :  { %s3324_s23 = smov 110   ;;  %s3325_s24 = smov 119  }
  0x1d   :  { %s3326_s25 = smov 120   ;;  %s3327_s26 = smov 108  }
  0x1e   :  { %s3332_s8 = smov 3   ;;  %s3333_s27 = smov 4  }
  0x1f   :  { %s3334_s28 = smov 6   ;;  %s3335_s29 = smov 7  }
  0x20   :  { %s3336_s30 = smov 10   ;;  %s3337_s6 = smov 8  }
  0x21   :  { %s3338_s7 = smov 11  }
  0x85   :  { %v35_v2 = vpop.permute.xlu0 %34 }
  0x86   :  { %v42_v3 = vsel %vm41_vm0, 0.0, %v35_v2  ;;  %v325_v2 = vld [vmem:[#allocation2 + $0x1a8] sm:$0xff] }
  0x87   :  { %v44_v4 = vsel %vm43_vm1, %v42_v3, 0.0  ;;  %v2657_v3 = vpack.c.bf16 %v325_v2, %v324_v0 }
  0x88   :  { %v46_v5 = vsel %vm45_vm2, %v44_v4, 0.0 }
  0x89   :  { %v39_v6 = vpop.permute.xlu0 %38  ;;  %2658 = vmatprep.subr.bf16.mxu1 %v2657_v3 }
  0x8a   :  { %v48_v7 = vsel %vm3812_vm3, %v46_v5, %v39_v6  ;;  %2660 = vmatpush3.bf16.msra.mxu1 %v2657_v3  ;;  %vm1469_vm3 = vcmask 121856  }
  0x8b   :  { %v3395_v8 = vsel %vm3811_vm4, %v48_v7, 0.0  ;;  %vm1460_vm4 = vcmask 97280  }
  0x8c   :  { %71 = vrot.lane.b32.xlu0 %v3395_v8, %s3308_s0  ;;  %57 = vrot.lane.b32.xlu1 %v3395_v8, %s3309_s2 }
  0x90   :  { %52 = vrot.lane.b32.xlu0 %v3395_v8, %s3310_s9  ;;  %60 = vrot.lane.b32.xlu1 %v3395_v8, %s3311_s10 }
  0x94   :  { %67 = vrot.lane.b32.xlu0 %v3395_v8, %s3312_s11  ;;  %74 = vrot.lane.b32.xlu1 %v3395_v8, %s3313_s12 }
  0x98   :  { %88 = vrot.lane.b32.xlu0 %v3395_v8, %s3314_s13  ;;  %64 = vrot.lane.b32.xlu1 %v3395_v8, %s3315_s14 }
  0x9c   :  { %102 = vrot.lane.b32.xlu0 %v3395_v8, %s3316_s15  ;;  %85 = vrot.lane.b32.xlu1 %v3395_v8, %s3317_s16 }
  0xa0   :  { %81 = vrot.lane.b32.xlu0 %v3395_v8, %s3318_s17  ;;  %99 = vrot.lane.b32.xlu1 %v3395_v8, %s3319_s18 }
  0xa4   :  { %95 = vrot.lane.b32.xlu0 %v3395_v8, %s3320_s19  ;;  %78 = vrot.lane.b32.xlu1 %v3395_v8, %s3321_s20 }
  0xa8   :  { %116 = vrot.lane.b32.xlu0 %v3395_v8, %s3322_s21  ;;  %92 = vrot.lane.b32.xlu1 %v3395_v8, %s3323_s22 }
  0xac   :  { %109 = vrot.lane.b32.xlu0 %v3395_v8, %s3324_s23  ;;  %113 = vrot.lane.b32.xlu1 %v3395_v8, %s3325_s24 }
  0xb0   :  { %106 = vrot.lane.b32.xlu1 %v3395_v8, %s3326_s25 }
  0xb4   :  { %120 = vrot.lane.b32.xlu1 %v3395_v8, %s3327_s26 }
  0xfe   :  { %v72_v13 = vpop.permute.xlu0 %71  ;;  %v58_v14 = vpop.permute.xlu1 %57 }
 0x102   :  { %v53_v15 = vpop.permute.xlu0 %52  ;;  %v61_v16 = vpop.permute.xlu1 %60 }
 0x103   :  { %v63_v17 = vsel %vm55_vm6, %v58_v14, %v61_v16  ;;  %v56_v25 = vsel %vm55_vm6, %v3395_v8, %v53_v15 }
 0x104   :  { %v125_v21 = vrot.slane %v63_v17, 4 }
 0x106   :  { %v68_v18 = vpop.permute.xlu0 %67  ;;  %v75_v19 = vpop.permute.xlu1 %74  ;;  %v140_v27 = vsel %vm139_vm7, %v56_v25, %v125_v21 }
 0x107   :  { %v77_v20 = vsel %vm55_vm6, %v72_v13, %v75_v19 }
 0x108   :  { %v128_v22 = vrot.slane %v77_v20, 4 }
 0x10a   :  { %v89_v23 = vpop.permute.xlu0 %88  ;;  %v65_v24 = vpop.permute.xlu1 %64 }
 0x10b   :  { %v70_v26 = vsel %vm55_vm6, %v65_v24, %v68_v18 }
 0x10c   :  { %v141_v28 = vsel %vm139_vm7, %v70_v26, %v128_v22 }
 0x10d   :  { %v2631_v29 = vpack.c.bf16 %v141_v28, %v140_v27 }
 0x10e   :  { %v103_v30 = vpop.permute.xlu0 %102  ;;  %v86_v31 = vpop.permute.xlu1 %85 }
 0x10f   :  { %2632 = vmatprep.subr.bf16.mxu0 %v2631_v29  ;;  %v91_v35 = vsel %vm55_vm6, %v86_v31, %v89_v23 }
 0x110   :  { %2634 = vmatpush3.bf16.msra.mxu0 %v2631_v29  ;;  %v131_v39 = vrot.slane %v91_v35, 4 }
 0x112   :  { %v82_v32 = vpop.permute.xlu0 %81  ;;  %v100_v33 = vpop.permute.xlu1 %99 }
 0x113   :  { %v105_v36 = vsel %vm55_vm6, %v100_v33, %v103_v30 }
 0x114   :  { %v134_v40 = vrot.slane %v105_v36, 4 }
 0x116   :  { %v79_v34 = vpop.permute.xlu1 %78  ;;  %v96_v37 = vpop.permute.xlu0 %95 }
 0x117   :  { %v84_v38 = vsel %vm55_vm6, %v79_v34, %v82_v32 }
 0x118   :  { %v142_v43 = vsel %vm139_vm7, %v84_v38, %v131_v39 }
 0x11a   :  { %v93_v41 = vpop.permute.xlu1 %92  ;;  %v117_v46 = vpop.permute.xlu0 %116 }
 0x11b   :  { %v98_v42 = vsel %vm55_vm6, %v93_v41, %v96_v37 }
 0x11c   :  { %v143_v44 = vsel %vm139_vm7, %v98_v42, %v134_v40 }
 0x11d   :  { %v2635_v45 = vpack.c.bf16 %v143_v44, %v142_v43 }
 0x11e   :  { %v114_v47 = vpop.permute.xlu1 %113  ;;  %v110_v50 = vpop.permute.xlu0 %109 }
 0x11f   :  { %2636 = vmatprep.subr.bf16.mxu0 %v2635_v45  ;;  %v119_v49 = vsel %vm55_vm6, %v114_v47, %v117_v46 }
 0x120   :  { %2638 = vmatpush3.bf16.msra.mxu0 %v2635_v45  ;;  %v137_v52 = vrot.slane %v119_v49, 4 }
 0x122   :  { %v107_v48 = vpop.permute.xlu1 %106 }
 0x123   :  { %v112_v51 = vsel %vm55_vm6, %v107_v48, %v110_v50 }
 0x124   :  { %v144_v57 = vsel %vm139_vm7, %v112_v51, %v137_v52 }
 0x126   :  { %v121_v53 = vpop.permute.xlu1 %120 }
 0x127   :  { %v123_v56 = vsel %vm55_vm6, %v53_v15, %v121_v53  ;;  %v492_v15 = vld [vmem:[#allocation2 + $0x18] sm:$0xff] }
 0x128   :  { %v145_v58 = vsel %vm139_vm7, %v123_v56, 1.0  ;;  %vm994_vm7 = vcmask 531456  }
 0x129   :  { %v2639_v59 = vpack.c.bf16 %v145_v58, %v144_v57 }
 0x12b   :  { %2641 = vmatprep.subr.msk.bf16.mxu0 %vm2640_vm10, %v2639_v59 }
 0x12c   :  { %2644 = vmatpush3.bf16.msk.msra.mxu0 %vm2640_vm10, %v2639_v59  ;;  %vm1200_vm10 = vcmask 15360  }
 0x12d   :  { %2646 = vmatprep.subr.bf16.mxu0 %v2645_v60 }
 0x12f   :  { %2441 = vmatmul.mubr.msk.f32.vlgmr.msra.gmra.mrb[0].mxu0 %vm148_vm5, %v147_v61  ;;  %vm808_vm5 = vcmask 31744  }
 0x130   :  { %2648 = vmatpush3.bf16.msra.mxu0 %v2645_v60 }
 0x131   :  { %2650 = vmatprep.subr.bf16.mxu0 %v2649_v1 }
 0x134   :  { %2652 = vmatpush3.bf16.msra.mxu0 %v2649_v1 }
 0x202   :  { %v2442_v4 = vpop.f32.mrb[0].mxu0 }
 0x203   :  { %v225_v5 = vpop.f32.mrb[1].mxu0  ;;  %v235_v7 = vmax.f32 %v2442_v4, 0.0 }
 0x204   :  { %v234_v6 = vmax.f32 %v225_v5, 0.0 }
 0x206   :  { %2451 = vmatprep.mubr.msk.f32.mxu0 %vm240_vm11, %v234_v6  ;;  %2462 = vmatprep.mubr.msk.f32.mxu1 %vm240_vm11, %v234_v6 }
 0x207   :  { %2452 = vmatmul.mubr.msk.f32.vlgmr.msra.gmra.mrb[2].mxu0 %vm240_vm11, %v235_v7  ;;  %2463 = vmatmul.mubr.msk.f32.vlgmr.msra.gmra.mrb[0].mxu1 %vm240_vm11, %v235_v7  ;;  %vm1436_vm11 = vcmask 23552  }
 0x208   :  { %2495 = vmatprep.mubr.msk.f32.mxu0 %vm496_vm12, %v492_v15 }
 0x2da   :  { %v2453_v8 = vpop.f32.mrb[2].mxu0  ;;  %v2464_v9 = vpop.f32.mrb[0].mxu1 }
 0x2db   :  { %v402_v10 = vmax.f32 %v2453_v8, %v2464_v9  ;;  %v313_v11 = vpop.f32.mrb[3].mxu0  ;;  %v392_v12 = vpop.f32.mrb[1].mxu1  ;;  %v3329_v9 = vmov 1.0  }
 0x2dc   :  { %v401_v13 = vmax.f32 %v313_v11, %v392_v12  ;;  %v494_v11 = vld [vmem:[#allocation2 + $0x128] sm:$0xff]  ;;  %v495_v12 = vld [vmem:[#allocation2 + $0x1b0] sm:$0xff] }
 0x2de   :  { %v2886_v14 = vpack.i.bf16 %v402_v10, %v401_v13 }
 0x2e0   :  { %2887 = vrot.lane.b32.xlu1 %v2886_v14, %s3309_s2  ;;  %2882 = vrot.lane.b32.xlu0 %v2886_v14, %s3323_s22 }
 0x2e4   :  { %2897 = vrot.lane.b32.xlu1 %v2886_v14, %s3315_s14  ;;  %2892 = vrot.lane.b32.xlu0 %v2886_v14, %s3319_s18 }
 0x2e8   :  { %2907 = vrot.lane.b32.xlu1 %v2886_v14, %s3308_s0  ;;  %2902 = vrot.lane.b32.xlu0 %v2886_v14, %s3326_s25 }
 0x2ec   :  { %2917 = vrot.lane.b32.xlu1 %v2886_v14, %s3321_s20  ;;  %2912 = vrot.lane.b32.xlu0 %v2886_v14, %s3325_s24 }
 0x2f0   :  { %2927 = vrot.lane.b32.xlu1 %v2886_v14, %s3317_s16  ;;  %2922 = vrot.lane.b32.xlu0 %v2886_v14, %s3310_s9 }
 0x2f4   :  { %2937 = vrot.lane.b32.xlu1 %v2886_v14, %s3312_s11  ;;  %2932 = vrot.lane.b32.xlu0 %v2886_v14, %s3311_s10  ;;  %v603_v14 = vld [vmem:[#allocation2 + $0xa8] sm:$0xff] }
 0x352   :  { %v2888_v16 = vpop.permute.xlu1 %2887  ;;  %v3470_v17 = vpop.permute.xlu0 %2882 }
 0x353   :  { %v2885_v18 = vunpack.i.h.bf16 %v3470_v17  ;;  %v2884_v19 = vunpack.i.l.bf16 %v3470_v17  ;;  %v2890_v25 = vunpack.i.h.bf16 %v2888_v16  ;;  %v2889_v26 = vunpack.i.l.bf16 %v2888_v16  ;;  %v701_v16 = vld [vmem:[#allocation2 + $0x28] sm:$0xff]  ;;  %v702_v17 = vld [vmem:[#allocation2 + $0xb0] sm:$0xff] }
 0x355   :  { %v412_v20 = vsel %vm411_vm13, %v401_v13, %v2884_v19  ;;  %v413_v21 = vsel %vm411_vm13, %v402_v10, %v2885_v18  ;;  %v493_v10 = vld [vmem:[#allocation2 + $0xa0] sm:$0xff] }
 0x356   :  { %v2898_v22 = vpop.permute.xlu1 %2897  ;;  %v2893_v23 = vpop.permute.xlu0 %2892  ;;  %v2661_v24 = vpack.c.bf16 %v413_v21, %v412_v20  ;;  %v602_v13 = vld [vmem:[#allocation2 + $0x20] sm:$0xff] }
 0x357   :  { %v2895_v27 = vunpack.i.h.bf16 %v2893_v23  ;;  %v2894_v28 = vunpack.i.l.bf16 %v2893_v23  ;;  %v2900_v34 = vunpack.i.h.bf16 %v2898_v22  ;;  %v2899_v35 = vunpack.i.l.bf16 %v2898_v22 }
 0x358   :  { %2662 = vmatprep.subr.bf16.mxu0 %v2661_v24  ;;  %v2689_v15 = vpack.c.bf16 %v603_v14, %v602_v13 }
 0x359   :  { %2664 = vmatpush3.bf16.msra.mxu0 %v2661_v24  ;;  %v426_v29 = vsel %vm411_vm13, %v2889_v26, %v2894_v28  ;;  %v427_v30 = vsel %vm411_vm13, %v2890_v25, %v2895_v27 }
 0x35a   :  { %v2908_v31 = vpop.permute.xlu1 %2907  ;;  %v2903_v32 = vpop.permute.xlu0 %2902  ;;  %v2665_v33 = vpack.c.bf16 %v427_v30, %v426_v29  ;;  %2690 = vmatprep.subr.bf16.mxu1 %v2689_v15 }
 0x35b   :  { %v2905_v36 = vunpack.i.h.bf16 %v2903_v32  ;;  %v2904_v37 = vunpack.i.l.bf16 %v2903_v32  ;;  %v2910_v43 = vunpack.i.h.bf16 %v2908_v31  ;;  %v2909_v44 = vunpack.i.l.bf16 %v2908_v31  ;;  %2692 = vmatpush3.bf16.msra.mxu1 %v2689_v15 }
 0x35c   :  { %2666 = vmatprep.subr.bf16.mxu0 %v2665_v33 }
 0x35d   :  { %2668 = vmatpush3.bf16.msra.mxu0 %v2665_v33  ;;  %v440_v38 = vsel %vm411_vm13, %v2899_v35, %v2904_v37  ;;  %v441_v39 = vsel %vm411_vm13, %v2900_v34, %v2905_v36 }
 0x35e   :  { %v2918_v40 = vpop.permute.xlu1 %2917  ;;  %v2913_v41 = vpop.permute.xlu0 %2912  ;;  %v2669_v42 = vpack.c.bf16 %v441_v39, %v440_v38 }
 0x35f   :  { %v2915_v45 = vunpack.i.h.bf16 %v2913_v41  ;;  %v2914_v46 = vunpack.i.l.bf16 %v2913_v41  ;;  %v2920_v52 = vunpack.i.h.bf16 %v2918_v40  ;;  %v2919_v53 = vunpack.i.l.bf16 %v2918_v40  ;;  %v857_v41 = vld [vmem:[#allocation2 + $0x30] sm:$0xff] }
 0x360   :  { %2670 = vmatprep.subr.bf16.mxu0 %v2669_v42 }
 0x361   :  { %2672 = vmatpush3.bf16.msra.mxu0 %v2669_v42  ;;  %v454_v47 = vsel %vm411_vm13, %v2909_v44, %v2914_v46  ;;  %v455_v48 = vsel %vm411_vm13, %v2910_v43, %v2915_v45 }
 0x362   :  { %v2928_v49 = vpop.permute.xlu1 %2927  ;;  %v2923_v50 = vpop.permute.xlu0 %2922  ;;  %v2673_v51 = vpack.c.bf16 %v455_v48, %v454_v47 }
 0x363   :  { %v2925_v54 = vunpack.i.h.bf16 %v2923_v50  ;;  %v2924_v55 = vunpack.i.l.bf16 %v2923_v50  ;;  %v2930_v58 = vunpack.i.h.bf16 %v2928_v49  ;;  %v2929_v59 = vunpack.i.l.bf16 %v2928_v49 }
 0x364   :  { %2674 = vmatprep.subr.bf16.mxu0 %v2673_v51 }
 0x365   :  { %2676 = vmatpush3.bf16.msra.mxu0 %v2673_v51  ;;  %v468_v56 = vsel %vm411_vm13, %v2919_v53, %v2924_v55  ;;  %v469_v57 = vsel %vm411_vm13, %v2920_v52, %v2925_v54 }
 0x366   :  { %v2938_v60 = vpop.permute.xlu1 %2937  ;;  %v2933_v61 = vpop.permute.xlu0 %2932  ;;  %v2677_v62 = vpack.c.bf16 %v469_v57, %v468_v56 }
 0x367   :  { %v2940_v63 = vunpack.i.h.bf16 %v2938_v60  ;;  %v2939_v0 = vunpack.i.l.bf16 %v2938_v60  ;;  %v2935_v1 = vunpack.i.h.bf16 %v2933_v61  ;;  %v2934_v2 = vunpack.i.l.bf16 %v2933_v61 }
 0x368   :  { %2678 = vmatprep.subr.bf16.mxu0 %v2677_v62 }
 0x369   :  { %2680 = vmatpush3.bf16.msra.mxu0 %v2677_v62  ;;  %v482_v3 = vsel %vm411_vm13, %v2929_v59, %v2934_v2  ;;  %v483_v4 = vsel %vm411_vm13, %v2930_v58, %v2935_v1  ;;  %v490_v5 = vsel %vm411_vm13, %v2884_v19, %v2939_v0  ;;  %v491_v6 = vsel %vm411_vm13, %v2885_v18, %v2940_v63 }
 0x36a   :  { %v2681_v7 = vpack.c.bf16 %v483_v4, %v482_v3  ;;  %v2685_v8 = vpack.c.bf16 %v491_v6, %v490_v5  ;;  %v2693_v18 = vpack.c.bf16 %v702_v17, %v701_v16 }
 0x36c   :  { %2682 = vmatprep.subr.bf16.mxu0 %v2681_v7  ;;  %2694 = vmatprep.subr.bf16.mxu1 %v2693_v18 }
 0x36d   :  { %2684 = vmatpush3.bf16.msra.mxu0 %v2681_v7 }
 0x36e   :  { %2686 = vmatprep.subr.bf16.mxu0 %v2685_v8 }
 0x371   :  { %2688 = vmatpush3.bf16.msra.mxu0 %v2685_v8 }
 0x372   :  { %2493 = vmatprep.subr.msk.mxu0 %vm509_vm14, %v3329_v9 }
 0x375   :  { %2494 = vmatpush3.msk.msra.mxu0 %vm509_vm14, %v3329_v9 }
 0x376   :  { %2496 = vmatmul.mubr.msk.f32.vlgmr.msra.gmra.mrb[4].mxu0 %vm496_vm12, %v493_v10 }
 0x377   :  { %2498 = vmatprep.mubr.msk.f32.mxu0 %vm496_vm12, %v494_v11 }
 0x37a   :  { %2499 = vmatmul.mubr.msk.f32.gmra.mrb[6].mxu0 %vm496_vm12, %v495_v12  ;;  %vm1443_vm12 = vcmask 48128  }
 0x449   :  { %v2497_v19 = vpop.f32.mrb[4].mxu0 }
 0x44a   :  { %v579_v20 = vpop.f32.mrb[5].mxu0  ;;  %v599_v22 = vmax.f32 %v2497_v19, 0.0 }
 0x44b   :  { %v598_v21 = vmax.f32 %v579_v20, 0.0 }
 0x44d   :  { %v2500_v23 = vpop.f32.mrb[6].mxu0  ;;  %2505 = vmatprep.mubr.msk.f32.mxu1 %vm55_vm6, %v598_v21 }
 0x44e   :  { %v589_v24 = vpop.f32.mrb[7].mxu0  ;;  %2506 = vmatmul.mubr.msk.f32.vlgmr.msra.gmra.mrb[2].mxu1 %vm55_vm6, %v599_v22  ;;  %v601_v26 = vmax.f32 %v2500_v23, 0.0 }
 0x44f   :  { %v600_v25 = vmax.f32 %v589_v24, 0.0  ;;  %2696 = vmatpush3.bf16.msra.mxu1 %v2693_v18 }
 0x451   :  { %2508 = vmatprep.mubr.msk.f32.mxu1 %vm55_vm6, %v600_v25 }
 0x452   :  { %2509 = vmatmul.mubr.msk.f32.gmra.mrb[4].mxu1 %vm55_vm6, %v601_v26 }
 0x453   :  { %2515 = vmatprep.mubr.msk.f32.mxu1 %vm55_vm6, %v598_v21  ;;  %v858_v21 = vld [vmem:[#allocation2 + $0xb8] sm:$0xff] }
 0x456   :  { %2516 = vmatmul.mubr.msk.f32.vlgmr.msra.gmra.mrb[6].mxu1 %vm55_vm6, %v599_v22 }
 0x457   :  { %2518 = vmatprep.mubr.msk.f32.mxu1 %vm55_vm6, %v600_v25 }
 0x45a   :  { %2519 = vmatmul.mubr.msk.f32.gmra.mrb[8].mxu1 %vm55_vm6, %v601_v26 }
 0x45b   :  { %2547 = vmatprep.mubr.msk.f32.mxu1 %vm859_vm15, %v857_v41 }
 0x521   :  { %v2507_v27 = vpop.f32.mrb[2].mxu1 }
 0x522   :  { %v682_v28 = vpop.f32.mrb[3].mxu1 }
 0x525   :  { %v2510_v29 = vpop.f32.mrb[4].mxu1 }
 0x526   :  { %v692_v30 = vpop.f32.mrb[5].mxu1 }
 0x529   :  { %v2517_v31 = vpop.f32.mrb[6].mxu1 }
 0x52a   :  { %v789_v32 = vmax.f32 %v2507_v27, %v2517_v31  ;;  %v769_v33 = vpop.f32.mrb[7].mxu1  ;;  %v990_v27 = vld [vmem:[#allocation2 + $0x38] sm:$0xff] }
 0x52b   :  { %v788_v34 = vmax.f32 %v682_v28, %v769_v33  ;;  %2568 = vmatprep.mubr.msk.f32.mxu0 %vm994_vm7, %v990_v27 }
 0x52d   :  { %v2520_v35 = vpop.f32.mrb[8].mxu1  ;;  %v2941_v36 = vpack.i.bf16 %v789_v32, %v788_v34 }
 0x52e   :  { %v791_v37 = vmax.f32 %v2510_v29, %v2520_v35  ;;  %v779_v38 = vpop.f32.mrb[9].mxu1 }
 0x52f   :  { %v790_v39 = vmax.f32 %v692_v30, %v779_v38  ;;  %2942 = vrot.lane.b32.xlu0 %v2941_v36, %s3315_s14 }
 0x531   :  { %v2951_v40 = vpack.i.bf16 %v791_v37, %v790_v39 }
 0x533   :  { %2947 = vrot.lane.b32.xlu0 %v2941_v36, %s3309_s2  ;;  %2952 = vrot.lane.b32.xlu1 %v2951_v40, %s3315_s14 }
 0x537   :  { %2962 = vrot.lane.b32.xlu0 %v2951_v40, %s3309_s2  ;;  %2957 = vrot.lane.b32.xlu1 %v2941_v36, %s3308_s0 }
 0x53b   :  { %2972 = vrot.lane.b32.xlu0 %v2941_v36, %s3321_s20  ;;  %2967 = vrot.lane.b32.xlu1 %v2951_v40, %s3308_s0 }
 0x53f   :  { %2977 = vrot.lane.b32.xlu1 %v2951_v40, %s3321_s20 }
 0x5a1   :  { %v2943_v42 = vpop.permute.xlu0 %2942 }
 0x5a2   :  { %v2945_v43 = vunpack.i.h.bf16 %v2943_v42  ;;  %v2944_v44 = vunpack.i.l.bf16 %v2943_v42 }
 0x5a4   :  { %v809_v45 = vsel %vm808_vm5, %v788_v34, %v2944_v44  ;;  %v810_v46 = vsel %vm808_vm5, %v789_v32, %v2945_v43 }
 0x5a5   :  { %v2948_v47 = vpop.permute.xlu0 %2947  ;;  %v2953_v48 = vpop.permute.xlu1 %2952  ;;  %v2697_v49 = vpack.c.bf16 %v810_v46, %v809_v45 }
 0x5a6   :  { %v2955_v50 = vunpack.i.h.bf16 %v2953_v48  ;;  %v2954_v51 = vunpack.i.l.bf16 %v2953_v48  ;;  %v2950_v57 = vunpack.i.h.bf16 %v2948_v47  ;;  %v2949_v58 = vunpack.i.l.bf16 %v2948_v47 }
 0x5a7   :  { %2698 = vmatprep.subr.bf16.mxu1 %v2697_v49 }
 0x5a8   :  { %2700 = vmatpush3.bf16.msra.mxu1 %v2697_v49  ;;  %v811_v52 = vsel %vm808_vm5, %v790_v39, %v2954_v51  ;;  %v812_v53 = vsel %vm808_vm5, %v791_v37, %v2955_v50 }
 0x5a9   :  { %v2963_v54 = vpop.permute.xlu0 %2962  ;;  %v2958_v55 = vpop.permute.xlu1 %2957  ;;  %v2701_v56 = vpack.c.bf16 %v812_v53, %v811_v52 }
 0x5aa   :  { %v2960_v59 = vunpack.i.h.bf16 %v2958_v55  ;;  %v2959_v60 = vunpack.i.l.bf16 %v2958_v55  ;;  %v2965_v63 = vunpack.i.h.bf16 %v2963_v54  ;;  %v2964_v0 = vunpack.i.l.bf16 %v2963_v54 }
 0x5ab   :  { %2702 = vmatprep.subr.bf16.mxu1 %v2701_v56 }
 0x5ac   :  { %2704 = vmatpush3.bf16.msra.mxu1 %v2701_v56  ;;  %v837_v61 = vsel %vm808_vm5, %v2949_v58, %v2959_v60  ;;  %v838_v62 = vsel %vm808_vm5, %v2950_v57, %v2960_v59  ;;  %v991_v58 = vld [vmem:[#allocation2 + $0xc0] sm:$0xff]  ;;  %v992_v59 = vld [vmem:[#allocation2 + $0x148] sm:$0xff]  ;;  %v993_v60 = vld [vmem:[#allocation2 + $0x1d0] sm:$0xff] }
 0x5ad   :  { %v2973_v1 = vpop.permute.xlu0 %2972  ;;  %v2968_v2 = vpop.permute.xlu1 %2967  ;;  %v2705_v3 = vpack.c.bf16 %v838_v62, %v837_v61  ;;  %v1116_v61 = vld [vmem:[#allocation2 + $0x40] sm:$0xff] }
 0x5ae   :  { %v2975_v4 = vunpack.i.h.bf16 %v2973_v1  ;;  %v2974_v5 = vunpack.i.l.bf16 %v2973_v1  ;;  %v2970_v6 = vunpack.i.h.bf16 %v2968_v2  ;;  %v2969_v7 = vunpack.i.l.bf16 %v2968_v2 }
 0x5af   :  { %2706 = vmatprep.subr.bf16.mxu1 %v2705_v3 }
 0x5b0   :  { %2708 = vmatpush3.bf16.msra.mxu1 %v2705_v3  ;;  %v839_v8 = vsel %vm808_vm5, %v2964_v0, %v2969_v7  ;;  %v840_v10 = vsel %vm808_vm5, %v2965_v63, %v2970_v6  ;;  %v853_v11 = vsel %vm808_vm5, %v2944_v44, %v2974_v5  ;;  %v854_v12 = vsel %vm808_vm5, %v2945_v43, %v2975_v4 }
 0x5b1   :  { %v2978_v13 = vpop.permute.xlu1 %2977  ;;  %v2709_v14 = vpack.c.bf16 %v840_v10, %v839_v8  ;;  %v2713_v17 = vpack.c.bf16 %v854_v12, %v853_v11 }
 0x5b2   :  { %v2980_v15 = vunpack.i.h.bf16 %v2978_v13  ;;  %v2979_v16 = vunpack.i.l.bf16 %v2978_v13 }
 0x5b3   :  { %2710 = vmatprep.subr.bf16.mxu1 %v2709_v14 }
 0x5b4   :  { %2712 = vmatpush3.bf16.msra.mxu1 %v2709_v14  ;;  %v855_v18 = vsel %vm808_vm5, %v2954_v51, %v2979_v16  ;;  %v856_v19 = vsel %vm808_vm5, %v2955_v50, %v2980_v15 }
 0x5b5   :  { %2714 = vmatprep.subr.bf16.mxu1 %v2713_v17  ;;  %v2717_v20 = vpack.c.bf16 %v856_v19, %v855_v18 }
 0x5b8   :  { %2716 = vmatpush3.bf16.msra.mxu1 %v2713_v17 }
 0x5b9   :  { %2718 = vmatprep.subr.bf16.mxu1 %v2717_v20 }
 0x5bc   :  { %2720 = vmatpush3.bf16.msra.mxu1 %v2717_v20 }
 0x5bd   :  { %2545 = vmatprep.subr.msk.mxu1 %vm509_vm14, %v3329_v9 }
 0x5c0   :  { %2546 = vmatpush3.msk.msra.mxu1 %vm509_vm14, %v3329_v9 }
 0x5c1   :  { %2548 = vmatmul.mubr.msk.f32.vlgmr.msra.gmra.mrb[10].mxu1 %vm859_vm15, %v858_v21  ;;  %v1117_v21 = vld [vmem:[#allocation2 + $0xc8] sm:$0xff] }
 0x694   :  { %v2549_v22 = vpop.f32.mrb[10].mxu1 }
 0x695   :  { %v942_v23 = vmax.f32 %v2549_v22, 0.0  ;;  %v932_v24 = vpop.f32.mrb[11].mxu1  ;;  %v1211_v22 = vld [vmem:[#allocation2 + $0x158] sm:$0xff] }
 0x696   :  { %v941_v25 = vmax.f32 %v932_v24, 0.0  ;;  %2592 = vmatprep.mubr.msk.f32.mxu1 %vm411_vm13, %v1211_v22 }
 0x698   :  { %v2986_v26 = vpack.i.bf16 %v942_v23, %v941_v25 }
 0x69a   :  { %2987 = vrot.lane.b32.xlu1 %v2986_v26, %s3309_s2  ;;  %2982 = vrot.lane.b32.xlu0 %v2986_v26, %s3308_s0 }
 0x69e   :  { %2997 = vrot.lane.b32.xlu1 %v2986_v26, %s3315_s14  ;;  %2992 = vrot.lane.b32.xlu0 %v2986_v26, %s3321_s20 }
 0x6a2   :  { %3007 = vrot.lane.b32.xlu1 %v2986_v26, %s3323_s22  ;;  %3002 = vrot.lane.b32.xlu0 %v2986_v26, %s3317_s16 }
 0x70c   :  { %v2988_v28 = vpop.permute.xlu1 %2987  ;;  %v2983_v29 = vpop.permute.xlu0 %2982 }
 0x70d   :  { %v2985_v30 = vunpack.i.h.bf16 %v2983_v29  ;;  %v2984_v31 = vunpack.i.l.bf16 %v2983_v29  ;;  %v2990_v37 = vunpack.i.h.bf16 %v2988_v28  ;;  %v2989_v38 = vunpack.i.l.bf16 %v2988_v28  ;;  %v1206_v28 = vld [vmem:[%s3807_s1] sm:$0xff]  ;;  %s3330_s1 = smov 1  }
 0x70f   :  { %v952_v32 = vsel %vm951_vm8, %v941_v25, %v2984_v31  ;;  %v953_v33 = vsel %vm951_vm8, %v942_v23, %v2985_v30  ;;  %v1209_v23 = vld [vmem:[#allocation2 + $0x48] sm:$0xff] }
 0x710   :  { %v2998_v34 = vpop.permute.xlu1 %2997  ;;  %v2993_v35 = vpop.permute.xlu0 %2992  ;;  %v2721_v36 = vpack.c.bf16 %v953_v33, %v952_v32  ;;  %v1212_v32 = vld [vmem:[#allocation2 + $0x1e0] sm:$0xff]  ;;  %v1210_v33 = vld [vmem:[#allocation2 + $0xd0] sm:$0xff] }
 0x711   :  { %v2995_v39 = vunpack.i.h.bf16 %v2993_v35  ;;  %v2994_v40 = vunpack.i.l.bf16 %v2993_v35  ;;  %v3000_v43 = vunpack.i.h.bf16 %v2998_v34  ;;  %v2999_v44 = vunpack.i.l.bf16 %v2998_v34  ;;  %v1213_v34 = vld [vmem:[#allocation2 + $0x268] sm:$0xff]  ;;  %v1214_v35 = vld [vmem:[#allocation2 + $0x2f0] sm:$0xff] }
 0x712   :  { %2722 = vmatprep.subr.bf16.mxu0 %v2721_v36 }
 0x713   :  { %2724 = vmatpush3.bf16.msra.mxu0 %v2721_v36  ;;  %v966_v41 = vsel %vm951_vm8, %v2989_v38, %v2994_v40  ;;  %v967_v42 = vsel %vm951_vm8, %v2990_v37, %v2995_v39  ;;  %v1215_v36 = vld [vmem:[#allocation2 + $0x378] sm:$0xff]  ;;  %v1216_v37 = vld [vmem:[#allocation2 + $0x400] sm:$0xff] }
 0x714   :  { %v3008_v45 = vpop.permute.xlu1 %3007  ;;  %v3003_v46 = vpop.permute.xlu0 %3002  ;;  %v2725_v47 = vpack.c.bf16 %v967_v42, %v966_v41 }
 0x715   :  { %v3010_v48 = vunpack.i.h.bf16 %v3008_v45  ;;  %v3009_v49 = vunpack.i.l.bf16 %v3008_v45  ;;  %v3005_v50 = vunpack.i.h.bf16 %v3003_v46  ;;  %v3004_v51 = vunpack.i.l.bf16 %v3003_v46 }
 0x716   :  { %2726 = vmatprep.subr.bf16.mxu0 %v2725_v47 }
 0x717   :  { %2728 = vmatpush3.bf16.msra.mxu0 %v2725_v47  ;;  %v980_v52 = vsel %vm951_vm8, %v2999_v44, %v3004_v51  ;;  %v981_v53 = vsel %vm951_vm8, %v3000_v43, %v3005_v50  ;;  %v988_v54 = vsel %vm951_vm8, %v2984_v31, %v3009_v49  ;;  %v989_v55 = vsel %vm951_vm8, %v2985_v30, %v3010_v48 }
 0x718   :  { %v2729_v56 = vpack.c.bf16 %v981_v53, %v980_v52  ;;  %v2733_v57 = vpack.c.bf16 %v989_v55, %v988_v54 }
 0x71a   :  { %2730 = vmatprep.subr.bf16.mxu0 %v2729_v56 }
 0x71b   :  { %2732 = vmatpush3.bf16.msra.mxu0 %v2729_v56 }
 0x71c   :  { %2734 = vmatprep.subr.bf16.mxu0 %v2733_v57 }
 0x71f   :  { %2736 = vmatpush3.bf16.msra.mxu0 %v2733_v57 }
 0x720   :  { %2566 = vmatprep.subr.msk.mxu0 %vm509_vm14, %v3329_v9 }
 0x723   :  { %2567 = vmatpush3.msk.msra.mxu0 %vm509_vm14, %v3329_v9 }
 0x724   :  { %2569 = vmatmul.mubr.msk.f32.vlgmr.msra.gmra.mrb[8].mxu0 %vm994_vm7, %v991_v58 }
 0x725   :  { %2571 = vmatprep.mubr.msk.f32.mxu0 %vm994_vm7, %v992_v59 }
 0x728   :  { %2572 = vmatmul.mubr.msk.f32.gmra.mrb[10].mxu0 %vm994_vm7, %v993_v60  ;;  %vm1446_vm7 = vcmask 56320  }
 0x729   :  { %2584 = vmatprep.mubr.msk.f32.mxu0 %vm1118_vm9, %v1116_v61 }
 0x7f7   :  { %v2570_v62 = vpop.f32.mrb[8].mxu0 }
 0x7f8   :  { %v2288_v63 = vmul.f32 -1.442695, %v2570_v62  ;;  %v1073_v0 = vpop.f32.mrb[9].mxu0 }
 0x7f9   :  { %v2287_v1 = vmul.f32 -1.442695, %v1073_v0 }
 0x7fa   :  { %3261 = vpow2.f32 %v2288_v63 }
 0x7fb   :  { %3263 = vpow2.f32 %v2287_v1  ;;  %v2573_v2 = vpop.f32.mrb[10].mxu0 }
 0x7fc   :  { %v2290_v3 = vmul.f32 -1.442695, %v2573_v2  ;;  %v1083_v4 = vpop.f32.mrb[11].mxu0 }
 0x7fd   :  { %v2289_v5 = vmul.f32 -1.442695, %v1083_v4 }
 0x7fe   :  { %3265 = vpow2.f32 %v2290_v3 }
 0x7ff   :  { %3267 = vpow2.f32 %v2289_v5 }
 0x804   :  { %v3262_v6 = vpop.eup %3261 }
 0x805   :  { %v3264_v7 = vpop.eup %3263  ;;  %v1105_v8 = vadd.f32 1.0, %v3262_v6 }
 0x806   :  { %v1104_v10 = vadd.f32 1.0, %v3264_v7 }
 0x807   :  { %3269 = vrcp.f32 %v1105_v8 }
 0x808   :  { %v3266_v11 = vpop.eup %3265  ;;  %3271 = vrcp.f32 %v1104_v10 }
 0x809   :  { %v3268_v12 = vpop.eup %3267  ;;  %v1107_v13 = vadd.f32 1.0, %v3266_v11 }
 0x80a   :  { %v1106_v14 = vadd.f32 1.0, %v3268_v12 }
 0x80b   :  { %3273 = vrcp.f32 %v1107_v13 }
 0x80c   :  { %3275 = vrcp.f32 %v1106_v14 }
 0x811   :  { %v3270_v15 = vpop.eup %3269 }
 0x812   :  { %v3272_v16 = vpop.eup %3271 }
 0x813   :  { %v2737_v17 = vpack.c.bf16 %v3270_v15, %v3272_v16 }
 0x815   :  { %v3274_v18 = vpop.eup %3273  ;;  %2738 = vmatprep.subr.bf16.mxu0 %v2737_v17 }
 0x816   :  { %v3276_v19 = vpop.eup %3275  ;;  %2740 = vmatpush3.bf16.msra.mxu0 %v2737_v17 }
 0x817   :  { %v2741_v20 = vpack.c.bf16 %v3274_v18, %v3276_v19 }
 0x819   :  { %2742 = vmatprep.subr.bf16.mxu0 %v2741_v20 }
 0x81a   :  { %2744 = vmatpush3.bf16.msra.mxu0 %v2741_v20 }
 0x81b   :  { %2582 = vmatprep.subr.msk.mxu0 %vm509_vm14, %v3329_v9 }
 0x81e   :  { %2583 = vmatpush3.msk.msra.mxu0 %vm509_vm14, %v3329_v9 }
 0x81f   :  { %2585 = vmatmul.mubr.msk.f32.vlgmr.msra.gmra.mrb[12].mxu0 %vm1118_vm9, %v1117_v21  ;;  %vm1451_vm9 = vcmask 72704  }
 0x820   :  { %2589 = vmatprep.mubr.msk.f32.mxu0 %vm411_vm13, %v1209_v23 }
 0x8f2   :  { %v2586_v24 = vpop.f32.mrb[12].mxu0 }
 0x8f3   :  { %1202 = vst.msk [vmem:[%s3810_s4 + $0x8] sm:$0xff] %vm1200_vm10, %v2586_v24  ;;  %v1203_v25 = vmul.f32 0.5, %v2586_v24  ;;  %v1191_v26 = vpop.f32.mrb[13].mxu0 }
 0x8f4   :  { %1201 = vst.msk [vmem:[%s3810_s4] sm:$0xff] %vm1200_vm10, %v1191_v26  ;;  %s3331_s4 = smov 2  }
 0x8f5   :  { %v1204_v27 = vmul.f32 1.442695, %v1203_v25 }
 0x8f7   :  { %3277 = vpow2.f32 %v1204_v27 }
 0x901   :  { %v3278_v29 = vpop.eup %3277 }
 0x902   :  { %v1207_v30 = vmul.f32 %v3278_v29, %v1206_v28 }
 0x904   :  { %v1208_v31 = vadd.f32 %v1207_v30, %v1191_v26 }
 0x906   :  { %2587 = vmatprep.subr.mxu0 %v1208_v31  ;;  %2836 = vmatprep.subr.mxu1 %v1208_v31 }
 0x907   :  { %2588 = vmatpush3.msra.mxu0 %v1208_v31  ;;  %2837 = vmatpush3.msra.mxu1 %v1208_v31 }
 0x908   :  { %2593 = vmatmul.mubr.msk.f32.vlgmr.msra.gmra.mrb[12].mxu1 %vm411_vm13, %v1212_v32  ;;  %2590 = vmatmul.mubr.msk.f32.vlgmr.msra.gmra.mrb[14].mxu0 %vm411_vm13, %v1210_v33 }
 0x909   :  { %2595 = vmatprep.mubr.msk.f32.mxu1 %vm411_vm13, %v1213_v34 }
 0x90c   :  { %2596 = vmatmul.mubr.msk.f32.gmra.mrb[14].mxu1 %vm411_vm13, %v1214_v35 }
 0x90d   :  { %2598 = vmatprep.mubr.msk.f32.mxu1 %vm411_vm13, %v1215_v36 }
 0x910   :  { %2599 = vmatmul.mubr.msk.f32.gmra.mrb[16].mxu1 %vm411_vm13, %v1216_v37 }
 0x9db   :  { %v2594_v38 = vpop.f32.mrb[12].mxu1  ;;  %v2591_v39 = vpop.f32.mrb[14].mxu0 }
 0x9dc   :  { %v1317_v40 = vpop.f32.mrb[13].mxu1  ;;  %v1307_v41 = vpop.f32.mrb[15].mxu0 }
 0x9df   :  { %v2597_v42 = vpop.f32.mrb[14].mxu1 }
 0x9e0   :  { %1474 = vrot.lane.b32.xlu1 %v2597_v42, %s3309_s2  ;;  %v1327_v43 = vpop.f32.mrb[15].mxu1 }
 0x9e1   :  { %1472 = vrot.lane.b32.xlu0 %v1327_v43, %s3309_s2 }
 0x9e3   :  { %v2600_v44 = vpop.f32.mrb[16].mxu1 }
 0x9e4   :  { %1480 = vrot.lane.b32.xlu1 %v2600_v44, %s3330_s1  ;;  %v1337_v45 = vpop.f32.mrb[17].mxu1 }
 0x9e5   :  { %1478 = vrot.lane.b32.xlu0 %v1337_v45, %s3330_s1 }
 0x9e8   :  { %1350 = vrot.lane.b32.xlu1 %v2591_v39, %s3330_s1 }
 0x9e9   :  { %1348 = vrot.lane.b32.xlu0 %v1307_v41, %s3330_s1  ;;  %s3339_s1 = smov 12  }
 0x9ec   :  { %1356 = vrot.lane.b32.xlu1 %v2591_v39, %s3331_s4 }
 0x9ed   :  { %1354 = vrot.lane.b32.xlu0 %v1307_v41, %s3331_s4  ;;  %s3340_s4 = smov 13  }
 0x9f0   :  { %1364 = vrot.lane.b32.xlu1 %v2594_v38, %s3332_s8 }
 0x9f1   :  { %1362 = vrot.lane.b32.xlu0 %v1317_v40, %s3332_s8  ;;  %s3341_s8 = smov 14  }
 0x9f4   :  { %1370 = vrot.lane.b32.xlu1 %v2594_v38, %s3333_s27 }
 0x9f5   :  { %1368 = vrot.lane.b32.xlu0 %v1317_v40, %s3333_s27  ;;  %s3342_s27 = smov 16  }
 0x9f8   :  { %1378 = vrot.lane.b32.xlu1 %v2597_v42, %s3306_s5 }
 0x9f9   :  { %1376 = vrot.lane.b32.xlu0 %v1327_v43, %s3306_s5 }
 0x9fc   :  { %1384 = vrot.lane.b32.xlu1 %v2597_v42, %s3334_s28 }
 0x9fd   :  { %1382 = vrot.lane.b32.xlu0 %v1327_v43, %s3334_s28  ;;  %s3345_s28 = smov 15  }
 0xa00   :  { %1392 = vrot.lane.b32.xlu1 %v2600_v44, %s3335_s29 }
 0xa01   :  { %1402 = vrot.lane.b32.xlu0 %v1307_v41, %s3336_s30 }
 0xa04   :  { %1398 = vrot.lane.b32.xlu1 %v2600_v44, %s3337_s6 }
 0xa05   :  { %1408 = vrot.lane.b32.xlu0 %v1307_v41, %s3338_s7 }
 0xa08   :  { %1404 = vrot.lane.b32.xlu1 %v2591_v39, %s3336_s30 }
 0xa09   :  { %1414 = vrot.lane.b32.xlu0 %v1317_v40, %s3339_s1 }
 0xa0c   :  { %1410 = vrot.lane.b32.xlu1 %v2591_v39, %s3338_s7 }
 0xa0d   :  { %1420 = vrot.lane.b32.xlu0 %v1317_v40, %s3340_s4 }
 0xa10   :  { %1416 = vrot.lane.b32.xlu1 %v2594_v38, %s3339_s1 }
 0xa11   :  { %1390 = vrot.lane.b32.xlu0 %v1337_v45, %s3335_s29 }
 0xa14   :  { %1422 = vrot.lane.b32.xlu1 %v2594_v38, %s3340_s4 }
 0xa15   :  { %1396 = vrot.lane.b32.xlu0 %v1337_v45, %s3337_s6 }
 0xa18   :  { %1428 = vrot.lane.b32.xlu1 %v2597_v42, %s3341_s8 }
 0xa19   :  { %1426 = vrot.lane.b32.xlu0 %v1327_v43, %s3341_s8 }
 0xa52   :  { %v1475_v46 = vpop.permute.xlu1 %1474 }
 0xa53   :  { %v1473_v47 = vpop.permute.xlu0 %1472  ;;  %v1485_v48 = vsel %vm951_vm8, %v1475_v46, %v2600_v44 }
 0xa54   :  { %v1484_v50 = vsel %vm951_vm8, %v1473_v47, %v1337_v45  ;;  %v1501_v47 = vld [vmem:[#allocation2 + $0xd8] sm:$0xff] }
 0xa56   :  { %v1481_v49 = vpop.permute.xlu1 %1480 }
 0xa57   :  { %v1487_v51 = vsel %vm1200_vm10, %v1485_v48, %v1481_v49  ;;  %v1479_v52 = vpop.permute.xlu0 %1478 }
 0xa58   :  { %v1486_v53 = vsel %vm1200_vm10, %v1484_v50, %v1479_v52  ;;  %v1489_v54 = vsel %vm1436_vm11, %v1487_v51, 0.0  ;;  %v1500_v50 = vld [vmem:[#allocation2 + $0x50] sm:$0xff] }
 0xa59   :  { %1494 = vrot.lane.b32.xlu1 %v1489_v54, %s3342_s27  ;;  %v1488_v55 = vsel %vm1436_vm11, %v1486_v53, 0.0 }
 0xa5a   :  { %1492 = vrot.lane.b32.xlu0 %v1488_v55, %s3342_s27  ;;  %v1351_v59 = vpop.permute.xlu1 %1350 }
 0xa5b   :  { %v1349_v56 = vpop.permute.xlu0 %1348  ;;  %v1433_v16 = vsel %vm951_vm8, 0.0, %v1351_v59 }
 0xa5c   :  { %v1432_v11 = vsel %vm951_vm8, 0.0, %v1349_v56  ;;  %vm1454_vm8 = vcmask 80896  }
 0xa5e   :  { %v1357_v61 = vpop.permute.xlu1 %1356 }
 0xa5f   :  { %v1355_v57 = vpop.permute.xlu0 %1354  ;;  %v1435_v22 = vsel %vm1200_vm10, %v1433_v16, %v1357_v61 }
 0xa60   :  { %v1434_v13 = vsel %vm1200_vm10, %v1432_v11, %v1355_v57  ;;  %vm1457_vm10 = vcmask 89088  }
 0xa62   :  { %v1365_v63 = vpop.permute.xlu1 %1364 }
 0xa63   :  { %v1363_v58 = vpop.permute.xlu0 %1362  ;;  %v1438_v25 = vsel %vm1436_vm11, %v1435_v22, %v1365_v63 }
 0xa64   :  { %v1437_v15 = vsel %vm1436_vm11, %v1434_v13, %v1363_v58  ;;  %vm1463_vm11 = vcmask 105472   ;;  %v1536_v58 = vld [vmem:[#allocation2 + $0x58] sm:$0xff] }
 0xa66   :  { %v1371_v1 = vpop.permute.xlu1 %1370 }
 0xa67   :  { %v1369_v60 = vpop.permute.xlu0 %1368  ;;  %v1440_v26 = vsel %vm808_vm5, %v1438_v25, %v1371_v1 }
 0xa68   :  { %v1439_v17 = vsel %vm808_vm5, %v1437_v15, %v1369_v60  ;;  %vm1466_vm5 = vcmask 113664  }
 0xa6a   :  { %v1379_v3 = vpop.permute.xlu1 %1378 }
 0xa6b   :  { %v1377_v62 = vpop.permute.xlu0 %1376  ;;  %v1442_v28 = vsel %vm41_vm0, %v1440_v26, %v1379_v3 }
 0xa6c   :  { %v1441_v18 = vsel %vm41_vm0, %v1439_v17, %v1377_v62  ;;  %v1537_v17 = vld [vmem:[#allocation2 + $0xe0] sm:$0xff] }
 0xa6e   :  { %v1385_v5 = vpop.permute.xlu1 %1384 }
 0xa6f   :  { %v1383_v0 = vpop.permute.xlu0 %1382  ;;  %v1445_v30 = vsel %vm1443_vm12, %v1442_v28, %v1385_v5 }
 0xa70   :  { %v1444_v20 = vsel %vm1443_vm12, %v1441_v18, %v1383_v0  ;;  %v1538_v18 = vld [vmem:[#allocation2 + $0x168] sm:$0xff] }
 0xa72   :  { %v1393_v7 = vpop.permute.xlu1 %1392 }
 0xa73   :  { %v1403_v2 = vpop.permute.xlu0 %1402  ;;  %v1448_v31 = vsel %vm1446_vm7, %v1445_v30, %v1393_v7 }
 0xa76   :  { %v1399_v10 = vpop.permute.xlu1 %1398 }
 0xa77   :  { %v1409_v4 = vpop.permute.xlu0 %1408  ;;  %v1450_v33 = vsel %vm411_vm13, %v1448_v31, %v1399_v10  ;;  %v3343_v31 = vmov 0.0|0.0  }
 0xa78   :  { %v1453_v35 = vsel %vm1451_vm9, %v1450_v33, 0.0 }
 0xa79   :  { %v1456_v38 = vsel %vm1454_vm8, %v1453_v35, 0.0 }
 0xa7a   :  { %v1405_v14 = vpop.permute.xlu1 %1404 }
 0xa7b   :  { %v1415_v6 = vpop.permute.xlu0 %1414  ;;  %v1459_v40 = vsel %vm1457_vm10, %v1456_v38, %v1405_v14  ;;  %v1918_v38 = vld [vmem:[#allocation2 + $0x70] sm:$0xff] }
 0xa7e   :  { %v1411_v21 = vpop.permute.xlu1 %1410 }
 0xa7f   :  { %v1421_v8 = vpop.permute.xlu0 %1420  ;;  %v1462_v42 = vsel %vm1460_vm4, %v1459_v40, %v1411_v21  ;;  %v1643_v21 = vld [vmem:[#allocation2 + $0xe8] sm:$0xff] }
 0xa82   :  { %v1417_v29 = vpop.permute.xlu1 %1416 }
 0xa83   :  { %v1391_v12 = vpop.permute.xlu0 %1390  ;;  %v1465_v44 = vsel %vm1463_vm11, %v1462_v42, %v1417_v29 }
 0xa84   :  { %v1447_v23 = vsel %vm1446_vm7, %v1444_v20, %v1391_v12  ;;  %v1642_v20 = vld [vmem:[#allocation2 + $0x60] sm:$0xff] }
 0xa85   :  { %v2757_v22 = vpack.c.bf16 %v1643_v21, %v1642_v20 }
 0xa86   :  { %v1423_v36 = vpop.permute.xlu1 %1422 }
 0xa87   :  { %v1397_v19 = vpop.permute.xlu0 %1396  ;;  %v1468_v46 = vsel %vm1466_vm5, %v1465_v44, %v1423_v36  ;;  %2758 = vmatprep.subr.bf16.mxu0 %v2757_v22 }
 0xa88   :  { %v1449_v24 = vsel %vm411_vm13, %v1447_v23, %v1397_v19  ;;  %v1539_v19 = vld [vmem:[#allocation2 + $0x1f0] sm:$0xff]  ;;  %2760 = vmatpush3.bf16.msra.mxu0 %v2757_v22 }
 0xa89   :  { %v1452_v27 = vsel %vm1451_vm9, %v1449_v24, 0.0  ;;  %2803 = vmatprep.subr.bf16.mxu0 %v3343_v31 }
 0xa8a   :  { %v1455_v32 = vsel %vm1454_vm8, %v1452_v27, 0.0  ;;  %v1429_v41 = vpop.permute.xlu1 %1428 }
 0xa8b   :  { %v1458_v34 = vsel %vm1457_vm10, %v1455_v32, %v1403_v2  ;;  %v1427_v43 = vpop.permute.xlu0 %1426  ;;  %v1471_v48 = vsel %vm1469_vm3, %v1468_v46, %v1429_v41 }
 0xa8c   :  { %v1461_v37 = vsel %vm1460_vm4, %v1458_v34, %v1409_v4  ;;  %vm1540_vm4 = vcmask 400384  }
 0xa8d   :  { %v1464_v39 = vsel %vm1463_vm11, %v1461_v37, %v1415_v6  ;;  %2615 = vmatprep.mubr.msk.f32.mxu1 %vm1540_vm4, %v1536_v58 }
 0xa8e   :  { %v1467_v45 = vsel %vm1466_vm5, %v1464_v39, %v1421_v8 }
 0xa8f   :  { %v1470_v51 = vsel %vm1469_vm3, %v1467_v45, %v1427_v43  ;;  %vm3813_vm3 = vcmask 252928  }
 0xacb   :  { %v1495_v49 = vpop.permute.xlu1 %1494 }
 0xacc   :  { %v1499_v52 = vsel %vm55_vm6, %v1471_v48, %v1495_v49  ;;  %v1493_v53 = vpop.permute.xlu0 %1492 }
 0xacd   :  { %v1503_v54 = vadd.f32 %v1501_v47, %v1499_v52  ;;  %v1498_v55 = vsel %vm55_vm6, %v1470_v51, %v1493_v53 }
 0xace   :  { %v1502_v56 = vadd.f32 %v1500_v50, %v1498_v55 }
 0xad0   :  { %v3016_v57 = vpack.i.bf16 %v1503_v54, %v1502_v56 }
 0xad2   :  { %3017 = vrot.lane.b32.xlu1 %v3016_v57, %s3309_s2  ;;  %3012 = vrot.lane.b32.xlu0 %v3016_v57, %s3315_s14 }
 0xad6   :  { %3027 = vrot.lane.b32.xlu1 %v3016_v57, %s3321_s20  ;;  %3022 = vrot.lane.b32.xlu0 %v3016_v57, %s3308_s0 }
 0xb44   :  { %v3018_v59 = vpop.permute.xlu1 %3017  ;;  %v3013_v60 = vpop.permute.xlu0 %3012 }
 0xb45   :  { %v3015_v61 = vunpack.i.h.bf16 %v3013_v60  ;;  %v3014_v62 = vunpack.i.l.bf16 %v3013_v60  ;;  %v3020_v1 = vunpack.i.h.bf16 %v3018_v59  ;;  %v3019_v2 = vunpack.i.l.bf16 %v3018_v59 }
 0xb47   :  { %v1512_v63 = vsel %vm411_vm13, %v1502_v56, %v3014_v62  ;;  %v1513_v0 = vsel %vm411_vm13, %v1503_v54, %v3015_v61 }
 0xb48   :  { %v3028_v3 = vpop.permute.xlu1 %3027  ;;  %v3023_v4 = vpop.permute.xlu0 %3022  ;;  %v2745_v5 = vpack.c.bf16 %v1513_v0, %v1512_v63 }
 0xb49   :  { %v3030_v6 = vunpack.i.h.bf16 %v3028_v3  ;;  %v3029_v7 = vunpack.i.l.bf16 %v3028_v3  ;;  %v3025_v8 = vunpack.i.h.bf16 %v3023_v4  ;;  %v3024_v10 = vunpack.i.l.bf16 %v3023_v4 }
 0xb4a   :  { %2746 = vmatprep.subr.bf16.mxu1 %v2745_v5 }
 0xb4b   :  { %2748 = vmatpush3.bf16.msra.mxu1 %v2745_v5  ;;  %v1526_v11 = vsel %vm411_vm13, %v3019_v2, %v3024_v10  ;;  %v1527_v12 = vsel %vm411_vm13, %v3020_v1, %v3025_v8  ;;  %v1534_v13 = vsel %vm411_vm13, %v3014_v62, %v3029_v7  ;;  %v1535_v14 = vsel %vm411_vm13, %v3015_v61, %v3030_v6  ;;  %vm3814_vm13 = vmmov %vm3813_vm3 }
 0xb4c   :  { %v2749_v15 = vpack.c.bf16 %v1527_v12, %v1526_v11  ;;  %v2753_v16 = vpack.c.bf16 %v1535_v14, %v1534_v13 }
 0xb4e   :  { %2750 = vmatprep.subr.bf16.mxu1 %v2749_v15 }
 0xb4f   :  { %2752 = vmatpush3.bf16.msra.mxu1 %v2749_v15 }
 0xb50   :  { %2754 = vmatprep.subr.bf16.mxu1 %v2753_v16 }
 0xb53   :  { %2756 = vmatpush3.bf16.msra.mxu1 %v2753_v16 }
 0xb54   :  { %2613 = vmatprep.subr.msk.mxu1 %vm509_vm14, %v3329_v9 }
 0xb57   :  { %2614 = vmatpush3.msk.msra.mxu1 %vm509_vm14, %v3329_v9 }
 0xb58   :  { %2616 = vmatmul.mubr.msk.f32.vlgmr.msra.gmra.mrb[18].mxu1 %vm1540_vm4, %v1537_v17  ;;  %2761 = vmatprep.subr.bf16.mxu1 %v3343_v31 }
 0xb59   :  { %2618 = vmatprep.mubr.msk.f32.mxu1 %vm1540_vm4, %v1538_v18 }
 0xb5c   :  { %2619 = vmatmul.mubr.msk.f32.gmra.mrb[20].mxu1 %vm1540_vm4, %v1539_v19 }
 0xb5d   :  { %2312 = vmatprep.mubr.msk.f32.mxu1 %vm859_vm15, %v1918_v38 }
 0xc2b   :  { %v2617_v23 = vpop.f32.mrb[18].mxu1 }
 0xc2c   :  { %v1619_v24 = vpop.f32.mrb[19].mxu1  ;;  %v1639_v26 = vmax.f32 %v2617_v23, 0.0 }
 0xc2d   :  { %v1638_v25 = vmax.f32 %v1619_v24, 0.0 }
 0xc2f   :  { %v2620_v27 = vpop.f32.mrb[20].mxu1  ;;  %2625 = vmatprep.mubr.msk.f32.mxu0 %vm55_vm6, %v1638_v25 }
 0xc30   :  { %v1629_v28 = vpop.f32.mrb[21].mxu1  ;;  %2626 = vmatmul.mubr.msk.f32.vlgmr.msra.gmra.mrb[16].mxu0 %vm55_vm6, %v1639_v26  ;;  %v1641_v30 = vmax.f32 %v2620_v27, 0.0 }
 0xc31   :  { %v1640_v29 = vmax.f32 %v1629_v28, 0.0 }
 0xc33   :  { %2628 = vmatprep.mubr.msk.f32.mxu0 %vm55_vm6, %v1640_v29 }
 0xc34   :  { %2629 = vmatmul.mubr.msk.f32.gmra.mrb[18].mxu0 %vm55_vm6, %v1641_v30 }
 0xd03   :  { %v2627_v32 = vpop.f32.mrb[16].mxu0 }
 0xd04   :  { %v1722_v33 = vpop.f32.mrb[17].mxu0 }
 0xd05   :  { %v3031_v34 = vpack.i.bf16 %v2627_v32, %v1722_v33 }
 0xd07   :  { %3032 = vrot.lane.b32.xlu0 %v3031_v34, %s3323_s22  ;;  %v2630_v35 = vpop.f32.mrb[18].mxu0 }
 0xd08   :  { %v1732_v36 = vpop.f32.mrb[19].mxu0 }
 0xd09   :  { %v3041_v37 = vpack.i.bf16 %v2630_v35, %v1732_v36 }
 0xd0b   :  { %3037 = vrot.lane.b32.xlu0 %v3031_v34, %s3309_s2  ;;  %3042 = vrot.lane.b32.xlu1 %v3041_v37, %s3323_s22 }
 0xd0f   :  { %3052 = vrot.lane.b32.xlu0 %v3041_v37, %s3309_s2  ;;  %3047 = vrot.lane.b32.xlu1 %v3031_v34, %s3319_s18 }
 0xd13   :  { %3057 = vrot.lane.b32.xlu0 %v3031_v34, %s3315_s14  ;;  %3062 = vrot.lane.b32.xlu1 %v3041_v37, %s3319_s18 }
 0xd17   :  { %3072 = vrot.lane.b32.xlu0 %v3041_v37, %s3315_s14  ;;  %3067 = vrot.lane.b32.xlu1 %v3031_v34, %s3326_s25 }
 0xd1b   :  { %3077 = vrot.lane.b32.xlu0 %v3031_v34, %s3308_s0  ;;  %3082 = vrot.lane.b32.xlu1 %v3041_v37, %s3326_s25 }
 0xd1f   :  { %3092 = vrot.lane.b32.xlu0 %v3041_v37, %s3308_s0  ;;  %3087 = vrot.lane.b32.xlu1 %v3031_v34, %s3325_s24 }
 0xd23   :  { %3097 = vrot.lane.b32.xlu0 %v3031_v34, %s3321_s20  ;;  %3102 = vrot.lane.b32.xlu1 %v3041_v37, %s3325_s24 }
 0xd27   :  { %3112 = vrot.lane.b32.xlu0 %v3041_v37, %s3321_s20  ;;  %3107 = vrot.lane.b32.xlu1 %v3031_v34, %s3310_s9 }
 0xd2b   :  { %3117 = vrot.lane.b32.xlu0 %v3031_v34, %s3317_s16  ;;  %3122 = vrot.lane.b32.xlu1 %v3041_v37, %s3310_s9 }
 0xd2f   :  { %3132 = vrot.lane.b32.xlu0 %v3041_v37, %s3317_s16  ;;  %3127 = vrot.lane.b32.xlu1 %v3031_v34, %s3311_s10 }
 0xd33   :  { %3142 = vrot.lane.b32.xlu0 %v3031_v34, %s3312_s11  ;;  %3137 = vrot.lane.b32.xlu1 %v3041_v37, %s3311_s10 }
 0xd37   :  { %3147 = vrot.lane.b32.xlu1 %v3041_v37, %s3312_s11 }
 0xd79   :  { %v3655_v39 = vpop.permute.xlu0 %3032 }
 0xd7a   :  { %v3035_v40 = vunpack.i.h.bf16 %v3655_v39  ;;  %v3034_v41 = vunpack.i.l.bf16 %v3655_v39 }
 0xd7c   :  { %v1758_v42 = vsel %vm55_vm6, %v2627_v32, %v3035_v40  ;;  %v1757_v43 = vsel %vm55_vm6, %v1722_v33, %v3034_v41 }
 0xd7d   :  { %v2762_v44 = vpack.c.bf16 %v1758_v42, %v1757_v43  ;;  %v3038_v45 = vpop.permute.xlu0 %3037  ;;  %v3665_v46 = vpop.permute.xlu1 %3042 }
 0xd7e   :  { %v3045_v47 = vunpack.i.h.bf16 %v3665_v46  ;;  %v3044_v48 = vunpack.i.l.bf16 %v3665_v46  ;;  %v3040_v54 = vunpack.i.h.bf16 %v3038_v45  ;;  %v3039_v55 = vunpack.i.l.bf16 %v3038_v45 }
 0xd7f   :  { %2763 = vmatpush1.bf16.msra.mxu1 %v2762_v44 }
 0xd80   :  { %v1760_v49 = vsel %vm55_vm6, %v2630_v35, %v3045_v47  ;;  %v1759_v50 = vsel %vm55_vm6, %v1732_v36, %v3044_v48  ;;  %2764 = vmatprep.subr.bf16.mxu1 %v3343_v31 }
 0xd81   :  { %v2765_v51 = vpack.c.bf16 %v1760_v49, %v1759_v50  ;;  %v3053_v52 = vpop.permute.xlu0 %3052  ;;  %v3048_v53 = vpop.permute.xlu1 %3047 }
 0xd82   :  { %v3050_v56 = vunpack.i.h.bf16 %v3048_v53  ;;  %v3049_v57 = vunpack.i.l.bf16 %v3048_v53  ;;  %v3055_v63 = vunpack.i.h.bf16 %v3053_v52  ;;  %v3054_v0 = vunpack.i.l.bf16 %v3053_v52 }
 0xd83   :  { %2766 = vmatpush1.bf16.msra.mxu1 %v2765_v51 }
 0xd84   :  { %v1786_v58 = vsel %vm55_vm6, %v3040_v54, %v3050_v56  ;;  %v1785_v59 = vsel %vm55_vm6, %v3039_v55, %v3049_v57  ;;  %2767 = vmatprep.subr.bf16.mxu1 %v3343_v31 }
 0xd85   :  { %v2768_v60 = vpack.c.bf16 %v1786_v58, %v1785_v59  ;;  %v3058_v61 = vpop.permute.xlu0 %3057  ;;  %v3063_v62 = vpop.permute.xlu1 %3062 }
 0xd86   :  { %v3065_v1 = vunpack.i.h.bf16 %v3063_v62  ;;  %v3064_v2 = vunpack.i.l.bf16 %v3063_v62  ;;  %v3060_v8 = vunpack.i.h.bf16 %v3058_v61  ;;  %v3059_v10 = vunpack.i.l.bf16 %v3058_v61 }
 0xd87   :  { %2769 = vmatpush1.bf16.msra.mxu1 %v2768_v60 }
 0xd88   :  { %v1788_v3 = vsel %vm55_vm6, %v3055_v63, %v3065_v1  ;;  %v1787_v4 = vsel %vm55_vm6, %v3054_v0, %v3064_v2  ;;  %2770 = vmatprep.subr.bf16.mxu1 %v3343_v31 }
 0xd89   :  { %v2771_v5 = vpack.c.bf16 %v1788_v3, %v1787_v4  ;;  %v3073_v6 = vpop.permute.xlu0 %3072  ;;  %v3068_v7 = vpop.permute.xlu1 %3067 }
 0xd8a   :  { %v3070_v11 = vunpack.i.h.bf16 %v3068_v7  ;;  %v3069_v12 = vunpack.i.l.bf16 %v3068_v7  ;;  %v3075_v18 = vunpack.i.h.bf16 %v3073_v6  ;;  %v3074_v19 = vunpack.i.l.bf16 %v3073_v6 }
 0xd8b   :  { %2772 = vmatpush1.bf16.msra.mxu1 %v2771_v5 }
 0xd8c   :  { %v1814_v13 = vsel %vm55_vm6, %v3060_v8, %v3070_v11  ;;  %v1813_v14 = vsel %vm55_vm6, %v3059_v10, %v3069_v12  ;;  %2773 = vmatprep.subr.bf16.mxu1 %v3343_v31 }
 0xd8d   :  { %v2774_v15 = vpack.c.bf16 %v1814_v13, %v1813_v14  ;;  %v3078_v16 = vpop.permute.xlu0 %3077  ;;  %v3083_v17 = vpop.permute.xlu1 %3082 }
 0xd8e   :  { %v3085_v20 = vunpack.i.h.bf16 %v3083_v17  ;;  %v3084_v21 = vunpack.i.l.bf16 %v3083_v17  ;;  %v3080_v27 = vunpack.i.h.bf16 %v3078_v16  ;;  %v3079_v28 = vunpack.i.l.bf16 %v3078_v16 }
 0xd8f   :  { %2775 = vmatpush1.bf16.msra.mxu1 %v2774_v15 }
 0xd90   :  { %v1816_v22 = vsel %vm55_vm6, %v3075_v18, %v3085_v20  ;;  %v1815_v23 = vsel %vm55_vm6, %v3074_v19, %v3084_v21  ;;  %2776 = vmatprep.subr.bf16.mxu1 %v3343_v31 }
 0xd91   :  { %v2777_v24 = vpack.c.bf16 %v1816_v22, %v1815_v23  ;;  %v3093_v25 = vpop.permute.xlu0 %3092  ;;  %v3088_v26 = vpop.permute.xlu1 %3087 }
 0xd92   :  { %v3090_v29 = vunpack.i.h.bf16 %v3088_v26  ;;  %v3089_v30 = vunpack.i.l.bf16 %v3088_v26  ;;  %v3095_v37 = vunpack.i.h.bf16 %v3093_v25  ;;  %v3094_v38 = vunpack.i.l.bf16 %v3093_v25 }
 0xd93   :  { %2778 = vmatpush1.bf16.msra.mxu1 %v2777_v24 }
 0xd94   :  { %v1842_v32 = vsel %vm55_vm6, %v3080_v27, %v3090_v29  ;;  %v1841_v33 = vsel %vm55_vm6, %v3079_v28, %v3089_v30  ;;  %2779 = vmatprep.subr.bf16.mxu1 %v3343_v31 }
 0xd95   :  { %v2780_v34 = vpack.c.bf16 %v1842_v32, %v1841_v33  ;;  %v3098_v35 = vpop.permute.xlu0 %3097  ;;  %v3103_v36 = vpop.permute.xlu1 %3102 }
 0xd96   :  { %v3105_v42 = vunpack.i.h.bf16 %v3103_v36  ;;  %v3104_v43 = vunpack.i.l.bf16 %v3103_v36  ;;  %v3100_v52 = vunpack.i.h.bf16 %v3098_v35  ;;  %v3099_v53 = vunpack.i.l.bf16 %v3098_v35 }
 0xd97   :  { %2781 = vmatpush1.bf16.msra.mxu1 %v2780_v34  ;;  %v1920_v34 = vld [vmem:[#allocation2 + $0xf8] sm:$0xff] }
 0xd98   :  { %v1844_v44 = vsel %vm55_vm6, %v3095_v37, %v3105_v42  ;;  %v1843_v45 = vsel %vm55_vm6, %v3094_v38, %v3104_v43  ;;  %2782 = vmatprep.subr.bf16.mxu1 %v3343_v31 }
 0xd99   :  { %v2783_v49 = vpack.c.bf16 %v1844_v44, %v1843_v45  ;;  %v3113_v50 = vpop.permute.xlu0 %3112  ;;  %v3108_v51 = vpop.permute.xlu1 %3107 }
 0xd9a   :  { %v3110_v54 = vunpack.i.h.bf16 %v3108_v51  ;;  %v3109_v55 = vunpack.i.l.bf16 %v3108_v51  ;;  %v3115_v61 = vunpack.i.h.bf16 %v3113_v50  ;;  %v3114_v62 = vunpack.i.l.bf16 %v3113_v50 }
 0xd9b   :  { %2784 = vmatpush1.bf16.msra.mxu1 %v2783_v49 }
 0xd9c   :  { %v1870_v56 = vsel %vm55_vm6, %v3100_v52, %v3110_v54  ;;  %v1869_v57 = vsel %vm55_vm6, %v3099_v53, %v3109_v55  ;;  %2785 = vmatprep.subr.bf16.mxu1 %v3343_v31 }
 0xd9d   :  { %v2786_v58 = vpack.c.bf16 %v1870_v56, %v1869_v57  ;;  %v3118_v59 = vpop.permute.xlu0 %3117  ;;  %v3123_v60 = vpop.permute.xlu1 %3122 }
 0xd9e   :  { %v3125_v63 = vunpack.i.h.bf16 %v3123_v60  ;;  %v3124_v0 = vunpack.i.l.bf16 %v3123_v60  ;;  %v3120_v6 = vunpack.i.h.bf16 %v3118_v59  ;;  %v3119_v7 = vunpack.i.l.bf16 %v3118_v59 }
 0xd9f   :  { %2787 = vmatpush1.bf16.msra.mxu1 %v2786_v58 }
 0xda0   :  { %v1872_v1 = vsel %vm55_vm6, %v3115_v61, %v3125_v63  ;;  %v1871_v2 = vsel %vm55_vm6, %v3114_v62, %v3124_v0  ;;  %2788 = vmatprep.subr.bf16.mxu1 %v3343_v31  ;;  %v2173_v63 = vld [vmem:[#allocation2 + $0x80] sm:$0xf] }
 0xda1   :  { %v2789_v3 = vpack.c.bf16 %v1872_v1, %v1871_v2  ;;  %v3133_v4 = vpop.permute.xlu0 %3132  ;;  %v3128_v5 = vpop.permute.xlu1 %3127  ;;  %2315 = vmatprep.mubr.msk.f32.mxu0 %vm1540_vm4, %v2173_v63 }
 0xda2   :  { %v3130_v8 = vunpack.i.h.bf16 %v3128_v5  ;;  %v3129_v10 = vunpack.i.l.bf16 %v3128_v5  ;;  %v3135_v13 = vunpack.i.h.bf16 %v3133_v4  ;;  %v3134_v14 = vunpack.i.l.bf16 %v3133_v4 }
 0xda3   :  { %2790 = vmatpush1.bf16.msra.mxu1 %v2789_v3 }
 0xda4   :  { %v1898_v11 = vsel %vm55_vm6, %v3120_v6, %v3130_v8  ;;  %v1897_v12 = vsel %vm55_vm6, %v3119_v7, %v3129_v10  ;;  %2791 = vmatprep.subr.bf16.mxu1 %v3343_v31 }
 0xda5   :  { %v2792_v15 = vpack.c.bf16 %v1898_v11, %v1897_v12  ;;  %v3143_v16 = vpop.permute.xlu0 %3142  ;;  %v3138_v17 = vpop.permute.xlu1 %3137 }
 0xda6   :  { %v3145_v18 = vunpack.i.h.bf16 %v3143_v16  ;;  %v3144_v19 = vunpack.i.l.bf16 %v3143_v16  ;;  %v3140_v20 = vunpack.i.h.bf16 %v3138_v17  ;;  %v3139_v21 = vunpack.i.l.bf16 %v3138_v17 }
 0xda7   :  { %2793 = vmatpush1.bf16.msra.mxu1 %v2792_v15 }
 0xda8   :  { %v1900_v22 = vsel %vm55_vm6, %v3135_v13, %v3140_v20  ;;  %v1899_v23 = vsel %vm55_vm6, %v3134_v14, %v3139_v21  ;;  %2794 = vmatprep.subr.bf16.mxu1 %v3343_v31  ;;  %v1914_v26 = vsel %vm55_vm6, %v3035_v40, %v3145_v18  ;;  %v1913_v27 = vsel %vm55_vm6, %v3034_v41, %v3144_v19  ;;  %v1917_v41 = vld [vmem:[#allocation2 + $0x68] sm:$0xff] }
 0xda9   :  { %v2795_v24 = vpack.c.bf16 %v1900_v22, %v1899_v23  ;;  %v3148_v25 = vpop.permute.xlu1 %3147  ;;  %v2798_v30 = vpack.c.bf16 %v1914_v26, %v1913_v27  ;;  %v3344_v40 = vmov 0.0  }
 0xdaa   :  { %v3150_v28 = vunpack.i.h.bf16 %v3148_v25  ;;  %v3149_v29 = vunpack.i.l.bf16 %v3148_v25 }
 0xdab   :  { %2796 = vmatpush1.bf16.msra.mxu1 %v2795_v24 }
 0xdac   :  { %2797 = vmatprep.subr.bf16.mxu1 %v3343_v31  ;;  %v1915_v32 = vsel %vm55_vm6, %v3044_v48, %v3149_v29  ;;  %v1916_v33 = vsel %vm55_vm6, %v3045_v47, %v3150_v28  ;;  %v1919_v48 = vld [vmem:[#allocation2 + $0xf0] sm:$0xff] }
 0xdad   :  { %v2801_v39 = vpack.c.bf16 %v1916_v33, %v1915_v32 }
 0xdaf   :  { %2799 = vmatpush1.bf16.msra.mxu1 %v2798_v30 }
 0xdb0   :  { %2800 = vmatprep.subr.bf16.mxu1 %v3343_v31 }
 0xdb3   :  { %2802 = vmatpush1.bf16.msra.mxu1 %v2801_v39 }
 0xdb4   :  { %1983 = vmatprep.subr.mxu1 %v3344_v40 }
 0xdb7   :  { %2311 = vmatpush1.msk.msra.mxu1 %vm509_vm14, %v3329_v9 }
 0xdb8   :  { %1992 = vmatmul.mubr.f32.vlgmr.msra.gmra.mrb[22].mxu1 %v1917_v41 }
 0xdb9   :  { %2313 = vmatprep.mubr.msk.f32.mxu1 %vm859_vm15, %v1920_v34  ;;  %vm3815_vm15 = vcmask 384000  }
 0xdba   :  { %vm3816_vm12 = vmmov %vm3815_vm15 }
 0xdbc   :  { %1997 = vmatmul.mubr.f32.gmra.mrb[24].mxu1 %v1919_v48 }
 0xe8b   :  { %v1993_v46 = vpop.f32.mrb[22].mxu1 }
 0xe8c   :  { %v1995_v47 = vpop.f32.mrb[23].mxu1  ;;  %v2002_v36 = vmax.f32 %v1993_v46, 0.0 }
 0xe8f   :  { %v1998_v35 = vpop.f32.mrb[24].mxu1 }
 0xe90   :  { %v2003_v37 = vmax.f32 %v1998_v35, 0.0  ;;  %v2000_v38 = vpop.f32.mrb[25].mxu1 }
 0xe92   :  { %v3156_v42 = vpack.i.bf16 %v2003_v37, %v2002_v36 }
 0xe94   :  { %3157 = vrot.lane.b32.xlu1 %v3156_v42, %s3345_s28  ;;  %3152 = vrot.lane.b32.xlu0 %v3156_v42, %s3306_s5 }
 0xf06   :  { %v3153_v43 = vpop.permute.xlu0 %3152  ;;  %v3158_v44 = vpop.permute.xlu1 %3157 }
 0xf07   :  { %v3155_v45 = vunpack.i.h.bf16 %v3153_v43  ;;  %v3154_v49 = vunpack.i.l.bf16 %v3153_v43  ;;  %v3160_v52 = vunpack.i.h.bf16 %v3158_v44  ;;  %v3159_v53 = vunpack.i.l.bf16 %v3158_v44 }
 0xf09   :  { %v2019_v50 = vsel %vm41_vm0, 0.0, %v3155_v45  ;;  %v2018_v51 = vsel %vm41_vm0, 0.0, %v3154_v49  ;;  %vm2247_vm0 = vcmask 257024  }
 0xf0a   :  { %v2021_v54 = vsel %vm43_vm1, %v2019_v50, 0.0  ;;  %v2020_v55 = vsel %vm43_vm1, %v2018_v51, 0.0 }
 0xf0b   :  { %v2023_v56 = vsel %vm45_vm2, %v2021_v54, 0.0  ;;  %v2022_v57 = vsel %vm45_vm2, %v2020_v55, 0.0 }
 0xf0c   :  { %v2025_v58 = vsel %vm3813_vm3, %v2023_v56, %v3160_v52  ;;  %v2024_v59 = vsel %vm3814_vm13, %v2022_v57, %v3159_v53 }
 0xf0d   :  { %v2027_v60 = vsel %vm3815_vm15, %v2025_v58, 0.0  ;;  %v2026_v61 = vsel %vm3816_vm12, %v2024_v59, 0.0 }
 0xf0e   :  { %v3166_v62 = vpack.i.bf16 %v2027_v60, %v2026_v61 }
 0xf10   :  { %3167 = vrot.lane.b32.xlu1 %v3166_v62, %s3309_s2  ;;  %3162 = vrot.lane.b32.xlu0 %v3166_v62, %s3310_s9 }
 0xf14   :  { %3177 = vrot.lane.b32.xlu1 %v3166_v62, %s3315_s14  ;;  %3172 = vrot.lane.b32.xlu0 %v3166_v62, %s3311_s10 }
 0xf18   :  { %3187 = vrot.lane.b32.xlu1 %v3166_v62, %s3308_s0  ;;  %3182 = vrot.lane.b32.xlu0 %v3166_v62, %s3312_s11 }
 0xf1c   :  { %3197 = vrot.lane.b32.xlu1 %v3166_v62, %s3321_s20  ;;  %3192 = vrot.lane.b32.xlu0 %v3166_v62, %s3313_s12 }
 0xf20   :  { %3207 = vrot.lane.b32.xlu1 %v3166_v62, %s3317_s16  ;;  %3202 = vrot.lane.b32.xlu0 %v3166_v62, %s3318_s17 }
 0xf24   :  { %3217 = vrot.lane.b32.xlu1 %v3166_v62, %s3323_s22  ;;  %3212 = vrot.lane.b32.xlu0 %v3166_v62, %s3314_s13 }
 0xf28   :  { %3227 = vrot.lane.b32.xlu1 %v3166_v62, %s3319_s18  ;;  %3222 = vrot.lane.b32.xlu0 %v3166_v62, %s3320_s19 }
 0xf2c   :  { %3237 = vrot.lane.b32.xlu1 %v3166_v62, %s3326_s25  ;;  %3232 = vrot.lane.b32.xlu0 %v3166_v62, %s3316_s15 }
 0xf30   :  { %3247 = vrot.lane.b32.xlu1 %v3166_v62, %s3325_s24  ;;  %3242 = vrot.lane.b32.xlu0 %v3166_v62, %s3324_s23 }
 0xf34   :  { %3257 = vrot.lane.b32.xlu1 %v3166_v62, %s3327_s26  ;;  %3252 = vrot.lane.b32.xlu0 %v3166_v62, %s3322_s21 }
 0xf82   :  { %v3168_v0 = vpop.permute.xlu1 %3167  ;;  %v3756_v1 = vpop.permute.xlu0 %3162 }
 0xf83   :  { %v3165_v2 = vunpack.i.h.bf16 %v3756_v1  ;;  %v3164_v3 = vunpack.i.l.bf16 %v3756_v1  ;;  %v3170_v10 = vunpack.i.h.bf16 %v3168_v0  ;;  %v3169_v11 = vunpack.i.l.bf16 %v3168_v0 }
 0xf85   :  { %v2037_v4 = vsel %vm55_vm6, %v2027_v60, %v3165_v2  ;;  %v2036_v5 = vsel %vm55_vm6, %v2026_v61, %v3164_v3 }
 0xf86   :  { %v2804_v6 = vpack.c.bf16 %v2037_v4, %v2036_v5  ;;  %v3178_v7 = vpop.permute.xlu1 %3177  ;;  %v3173_v8 = vpop.permute.xlu0 %3172 }
 0xf87   :  { %v3175_v12 = vunpack.i.h.bf16 %v3173_v8  ;;  %v3174_v13 = vunpack.i.l.bf16 %v3173_v8  ;;  %v3180_v19 = vunpack.i.h.bf16 %v3178_v7  ;;  %v3179_v20 = vunpack.i.l.bf16 %v3178_v7 }
 0xf88   :  { %2805 = vmatpush1.bf16.msra.mxu0 %v2804_v6 }
 0xf89   :  { %v2051_v14 = vsel %vm55_vm6, %v3170_v10, %v3175_v12  ;;  %v2050_v15 = vsel %vm55_vm6, %v3169_v11, %v3174_v13  ;;  %2806 = vmatprep.subr.bf16.mxu0 %v3343_v31 }
 0xf8a   :  { %v2807_v16 = vpack.c.bf16 %v2051_v14, %v2050_v15  ;;  %v3188_v17 = vpop.permute.xlu1 %3187  ;;  %v3183_v18 = vpop.permute.xlu0 %3182 }
 0xf8b   :  { %v3185_v21 = vunpack.i.h.bf16 %v3183_v18  ;;  %v3184_v22 = vunpack.i.l.bf16 %v3183_v18  ;;  %v3190_v28 = vunpack.i.h.bf16 %v3188_v17  ;;  %v3189_v29 = vunpack.i.l.bf16 %v3188_v17 }
 0xf8c   :  { %2808 = vmatpush1.bf16.msra.mxu0 %v2807_v16 }
 0xf8d   :  { %v2065_v23 = vsel %vm55_vm6, %v3180_v19, %v3185_v21  ;;  %v2064_v24 = vsel %vm55_vm6, %v3179_v20, %v3184_v22  ;;  %2809 = vmatprep.subr.bf16.mxu0 %v3343_v31 }
 0xf8e   :  { %v2810_v25 = vpack.c.bf16 %v2065_v23, %v2064_v24  ;;  %v3198_v26 = vpop.permute.xlu1 %3197  ;;  %v3193_v27 = vpop.permute.xlu0 %3192 }
 0xf8f   :  { %v3195_v30 = vunpack.i.h.bf16 %v3193_v27  ;;  %v3194_v32 = vunpack.i.l.bf16 %v3193_v27  ;;  %v3200_v46 = vunpack.i.h.bf16 %v3198_v26  ;;  %v3199_v47 = vunpack.i.l.bf16 %v3198_v26 }
 0xf90   :  { %2811 = vmatpush1.bf16.msra.mxu0 %v2810_v25 }
 0xf91   :  { %v2079_v33 = vsel %vm55_vm6, %v3190_v28, %v3195_v30  ;;  %v2078_v39 = vsel %vm55_vm6, %v3189_v29, %v3194_v32  ;;  %2812 = vmatprep.subr.bf16.mxu0 %v3343_v31 }
 0xf92   :  { %v2813_v41 = vpack.c.bf16 %v2079_v33, %v2078_v39  ;;  %v3208_v34 = vpop.permute.xlu1 %3207  ;;  %v3203_v48 = vpop.permute.xlu0 %3202 }
 0xf93   :  { %v3205_v35 = vunpack.i.h.bf16 %v3203_v48  ;;  %v3204_v36 = vunpack.i.l.bf16 %v3203_v48  ;;  %v3210_v45 = vunpack.i.h.bf16 %v3208_v34  ;;  %v3209_v49 = vunpack.i.l.bf16 %v3208_v34  ;;  %v2172_v48 = vld [vmem:[#allocation2 + $0x78] sm:$0xf] }
 0xf94   :  { %2814 = vmatpush1.bf16.msra.mxu0 %v2813_v41 }
 0xf95   :  { %v2093_v37 = vsel %vm55_vm6, %v3200_v46, %v3205_v35  ;;  %v2092_v38 = vsel %vm55_vm6, %v3199_v47, %v3204_v36  ;;  %2815 = vmatprep.subr.bf16.mxu0 %v3343_v31 }
 0xf96   :  { %v2816_v42 = vpack.c.bf16 %v2093_v37, %v2092_v38  ;;  %v3218_v43 = vpop.permute.xlu1 %3217  ;;  %v3213_v44 = vpop.permute.xlu0 %3212 }
 0xf97   :  { %v3215_v50 = vunpack.i.h.bf16 %v3213_v44  ;;  %v3214_v51 = vunpack.i.l.bf16 %v3213_v44  ;;  %v3220_v57 = vunpack.i.h.bf16 %v3218_v43  ;;  %v3219_v58 = vunpack.i.l.bf16 %v3218_v43 }
 0xf98   :  { %2817 = vmatpush1.bf16.msra.mxu0 %v2816_v42 }
 0xf99   :  { %v2107_v52 = vsel %vm55_vm6, %v3210_v45, %v3215_v50  ;;  %v2106_v53 = vsel %vm55_vm6, %v3209_v49, %v3214_v51  ;;  %2818 = vmatprep.subr.bf16.mxu0 %v3343_v31 }
 0xf9a   :  { %v2819_v54 = vpack.c.bf16 %v2107_v52, %v2106_v53  ;;  %v3228_v55 = vpop.permute.xlu1 %3227  ;;  %v3223_v56 = vpop.permute.xlu0 %3222 }
 0xf9b   :  { %v3225_v59 = vunpack.i.h.bf16 %v3223_v56  ;;  %v3224_v60 = vunpack.i.l.bf16 %v3223_v56  ;;  %v3230_v5 = vunpack.i.h.bf16 %v3228_v55  ;;  %v3229_v6 = vunpack.i.l.bf16 %v3228_v55 }
 0xf9c   :  { %2820 = vmatpush1.bf16.msra.mxu0 %v2819_v54 }
 0xf9d   :  { %v2121_v61 = vsel %vm55_vm6, %v3220_v57, %v3225_v59  ;;  %v2120_v62 = vsel %vm55_vm6, %v3219_v58, %v3224_v60  ;;  %2821 = vmatprep.subr.bf16.mxu0 %v3343_v31 }
 0xf9e   :  { %v2822_v63 = vpack.c.bf16 %v2121_v61, %v2120_v62  ;;  %v3238_v0 = vpop.permute.xlu1 %3237  ;;  %v3233_v4 = vpop.permute.xlu0 %3232 }
 0xf9f   :  { %v3235_v7 = vunpack.i.h.bf16 %v3233_v4  ;;  %v3234_v8 = vunpack.i.l.bf16 %v3233_v4  ;;  %v3240_v15 = vunpack.i.h.bf16 %v3238_v0  ;;  %v3239_v16 = vunpack.i.l.bf16 %v3238_v0 }
 0xfa0   :  { %2823 = vmatpush1.bf16.msra.mxu0 %v2822_v63 }
 0xfa1   :  { %v2135_v10 = vsel %vm55_vm6, %v3230_v5, %v3235_v7  ;;  %v2134_v11 = vsel %vm55_vm6, %v3229_v6, %v3234_v8  ;;  %2824 = vmatprep.subr.bf16.mxu0 %v3343_v31 }
 0xfa2   :  { %v2825_v12 = vpack.c.bf16 %v2135_v10, %v2134_v11  ;;  %v3248_v13 = vpop.permute.xlu1 %3247  ;;  %v3243_v14 = vpop.permute.xlu0 %3242 }
 0xfa3   :  { %v3245_v17 = vunpack.i.h.bf16 %v3243_v14  ;;  %v3244_v18 = vunpack.i.l.bf16 %v3243_v14  ;;  %v3250_v21 = vunpack.i.h.bf16 %v3248_v13  ;;  %v3249_v22 = vunpack.i.l.bf16 %v3248_v13 }
 0xfa4   :  { %2826 = vmatpush1.bf16.msra.mxu0 %v2825_v12 }
 0xfa5   :  { %v2149_v19 = vsel %vm55_vm6, %v3240_v15, %v3245_v17  ;;  %v2148_v20 = vsel %vm55_vm6, %v3239_v16, %v3244_v18  ;;  %2827 = vmatprep.subr.bf16.mxu0 %v3343_v31 }
 0xfa6   :  { %v2828_v23 = vpack.c.bf16 %v2149_v19, %v2148_v20  ;;  %v3258_v24 = vpop.permute.xlu1 %3257  ;;  %v3253_v25 = vpop.permute.xlu0 %3252 }
 0xfa7   :  { %v3260_v26 = vunpack.i.h.bf16 %v3258_v24  ;;  %v3259_v27 = vunpack.i.l.bf16 %v3258_v24  ;;  %v3255_v28 = vunpack.i.h.bf16 %v3253_v25  ;;  %v3254_v29 = vunpack.i.l.bf16 %v3253_v25 }
 0xfa8   :  { %2829 = vmatpush1.bf16.msra.mxu0 %v2828_v23 }
 0xfa9   :  { %v2163_v30 = vsel %vm55_vm6, %v3250_v21, %v3255_v28  ;;  %v2162_v32 = vsel %vm55_vm6, %v3249_v22, %v3254_v29  ;;  %2830 = vmatprep.subr.bf16.mxu0 %v3343_v31  ;;  %v2170_v39 = vsel %vm55_vm6, %v3164_v3, %v3259_v27  ;;  %v2171_v41 = vsel %vm55_vm6, %v3165_v2, %v3260_v26 }
 0xfaa   :  { %v2831_v33 = vpack.c.bf16 %v2163_v30, %v2162_v32  ;;  %v2834_v34 = vpack.c.bf16 %v2171_v41, %v2170_v39 }
 0xfac   :  { %2832 = vmatpush1.bf16.msra.mxu0 %v2831_v33 }
 0xfad   :  { %2833 = vmatprep.subr.bf16.mxu0 %v3343_v31 }
 0xfb0   :  { %2835 = vmatpush1.bf16.msra.mxu0 %v2834_v34 }
 0xfb1   :  { %2221 = vmatprep.subr.mxu0 %v3344_v40 }
 0xfb4   :  { %2314 = vmatpush1.msk.msra.mxu0 %vm509_vm14, %v3329_v9 }
 0xfb5   :  { %2242 = vmatmul.mubr.f32.vlgmr.msra.gmra.mrb[20].mxu0 %v2172_v48 }
0x1088   :  { %v2243_v46 = vpop.f32.mrb[20].mxu0 }
0x1089   :  { %2248 = vst.msk [vmem:[%s3809_s3] sm:$0xf] %vm2247_vm0, %v2243_v46  ;;  %v2245_v1 = vpop.f32.mrb[21].mxu0 }
0x108a   :  { %2257 = vsyncpa [#allocation3], 1 }

</bundles_post_ra>
